<compile_context>
chip_gen: v6e
topology: v6e:2x2x1
jax: 0.10.0
libtpu: 0.0.40
codegen_flags: <defaults>
</compile_context>

<pallas_src>
import jax
import jax.numpy as jnp
from jax import lax
from jax.experimental import pallas as pl
from jax.experimental.pallas import tpu as pltpu


def bottleneck_kernel(x_ref, w1_ref, w2_ref, s1_ref, b1_ref, b2_ref,
                      out_ref, pad_ref):
    # x_ref:   (H+2, W, Cin)      bf16 row-padded input image (resident per batch)
    # w1_ref:  (Cin, Cint)        bf16 1x1 conv weight, BN2 scale pre-folded
    # w2_ref:  (3, 3, Cint, G)    bf16 3x3 conv weight (HWIO)
    # s1_ref:  (1, 1, Cin)        f32 folded BN1 scale
    # b1_ref:  (1, 1, Cin)        f32 folded BN1 shift
    # b2_ref:  (1, 1, Cint)       f32 folded BN2 shift
    # out_ref: (TH, W, G)         bf16 new-channel output tile (lane offset 0)
    # pad_ref: (TH+2, W+2, Cint)  bf16 VMEM scratch (zero-padded conv2 input)
    TH, W, G = out_ref.shape
    Cin = x_ref.shape[-1]
    Cint = w1_ref.shape[-1]

    ht = pl.program_id(1)
    n_h = pl.num_programs(1)

    row_start = ht * TH
    if TH % 8 == 0:
        row_start = pl.multiple_of(row_start, 8)

    # Halo'd input rows: padded rows [ht*TH, ht*TH + TH + 2) correspond to
    # image rows [ht*TH - 1, ht*TH + TH].
    xh = x_ref[pl.ds(row_start, TH + 2), :, :].astype(jnp.float32)  # (TH+2, W, Cin)

    # BN1 + ReLU in f32, then bf16 for the MXU.
    a = jnp.maximum(xh * s1_ref[...] + b1_ref[...], 0.0).astype(jnp.bfloat16)

    dn = (((2,), (0,)), ((), ()))  # contract last axis of activation with dim 0 of weight

    # 1x1 conv (BN2 scale folded into w1) + BN2 shift + ReLU.
    h = lax.dot_general(a, w1_ref[...], dn,
                        preferred_element_type=jnp.float32)         # (TH+2, W, Cint)
    h = jnp.maximum(h + b2_ref[...], 0.0).astype(jnp.bfloat16)

    # Build the zero-padded conv2 input tile in VMEM scratch.  Every border is
    # re-derived each step (interior halo rows come from the computed h; only
    # image-edge rows / the left-right columns are zero), so correctness does
    # not depend on a previous grid step's scratch contents (megacore-safe).
    pad_ref[:, 1:W + 1, :] = h
    zcol = jnp.zeros((TH + 2, 1, Cint), jnp.bfloat16)
    pad_ref[:, 0:1, :] = zcol
    pad_ref[:, W + 1:W + 2, :] = zcol

    zrow = jnp.zeros((1, W + 2, Cint), jnp.bfloat16)

    @pl.when(ht == 0)
    def _():
        pad_ref[0:1, :, :] = zrow          # top image edge -> true zero padding

    @pl.when(ht == n_h - 1)
    def _():
        pad_ref[TH + 1:TH + 2, :, :] = zrow  # bottom image edge

    # 3x3 conv as 9 accumulating K=Cint matmuls (no im2col materialization).
    acc = jnp.zeros((TH, W, G), jnp.float32)
    for dy in range(3):
        for dx in range(3):
            tap = pad_ref[dy:dy + TH, dx:dx + W, :]                  # (TH, W, Cint)
            acc = acc + lax.dot_general(tap, w2_ref[dy, dx], dn,
                                        preferred_element_type=jnp.float32)

    # Dropout: PyTorch eval-mode dropout is identity.
    # TODO(synk): training-mode dropout (Bernoulli mask / (1-p)) not implemented.
    out_ref[...] = acc.astype(jnp.bfloat16)


def _pick_tile_h(H, target):
    if H <= target:
        return H
    for th in range(target, 0, -1):
        if H % th == 0:
            return th
    return H


def _fold_params(params, Cin, Cint):
    eps = 1e-5
    s1 = params["gamma1"] / jnp.sqrt(params["var1"] + eps)
    b1 = params["beta1"] - params["mean1"] * s1
    s2 = params["gamma2"] / jnp.sqrt(params["var2"] + eps)
    b2 = params["beta2"] - params["mean2"] * s2
    w1f = (params["w1"] * s2[None, :]).astype(jnp.bfloat16)        # (Cin, Cint)
    w2f = params["w2"].astype(jnp.bfloat16)                        # (3, 3, Cint, G)
    s1 = s1.reshape(1, 1, Cin).astype(jnp.float32)
    b1 = b1.reshape(1, 1, Cin).astype(jnp.float32)
    b2 = b2.reshape(1, 1, Cint).astype(jnp.float32)
    return w1f, w2f, s1, b1, b2


def bottleneck_new_features_nhwc(x_nhwc, params, *, tile_h=8):
    """Computes only the G new channels: (N,H,W,Cin) -> (N,H,W,G) bf16.

    When stacking DenseNet blocks keep the growing NHWC feature buffer at the
    caller and append this result; that avoids re-copying x every block."""
    N, H, W, Cin = x_nhwc.shape
    Cint = params["w1"].shape[1]
    G = params["w2"].shape[-1]
    w1f, w2f, s1, b1, b2 = _fold_params(params, Cin, Cint)

    TH = _pick_tile_h(H, tile_h)
    n_h = H // TH

    # bf16 activation I/O; 1-row zero pad top/bottom so every h-tile can read a
    # full (TH+2)-row halo with static-size dynamic slices (pad-row *values*
    # never reach the output: their conv2 input rows are re-zeroed in-kernel).
    x_pad = jnp.pad(x_nhwc.astype(jnp.bfloat16), ((0, 0), (1, 1), (0, 0), (0, 0)))

    # VMEM budget: resident padded input (double-buffered), output tiles,
    # weights, pad scratch, and in-kernel temporaries (a, h f32+bf16, acc, taps).
    bf, f32 = 2, 4
    need = (
        2 * (H + 2) * W * Cin * bf                      # x_pad buffers
        + 2 * TH * W * G * bf                           # output double buffer
        + (Cin * Cint + 9 * Cint * G) * bf              # weights
        + (2 * Cin + Cint) * f32                        # BN vectors
        + (TH + 2) * (W + 2) * Cint * bf                # pad scratch
        + (TH + 2) * W * (Cin * (f32 + bf) + Cint * (f32 + bf))  # xh, a, h
        + TH * W * (G * f32 + 2 * Cint * bf)            # acc + tap temporaries
    )
    try:
        phys = int(getattr(pltpu.get_tpu_info(), "vmem_capacity_bytes",
                           64 * 1024 * 1024))
    except Exception:
        phys = 64 * 1024 * 1024
    cap = (phys * 3) // 4                               # headroom (v7x: ~48 MiB)
    vmem_limit = int(min(cap, max(16 * 1024 * 1024, 2 * need)))

    return pl.pallas_call(
        bottleneck_kernel,
        out_shape=jax.ShapeDtypeStruct((N, H, W, G), jnp.bfloat16),
        grid_spec=pltpu.PrefetchScalarGridSpec(
            num_scalar_prefetch=0,
            grid=(N, n_h),
            in_specs=[
                pl.BlockSpec((None, H + 2, W, Cin), lambda n, h: (n, 0, 0, 0)),
                pl.BlockSpec((Cin, Cint), lambda n, h: (0, 0)),
                pl.BlockSpec((3, 3, Cint, G), lambda n, h: (0, 0, 0, 0)),
                pl.BlockSpec((1, 1, Cin), lambda n, h: (0, 0, 0)),
                pl.BlockSpec((1, 1, Cin), lambda n, h: (0, 0, 0)),
                pl.BlockSpec((1, 1, Cint), lambda n, h: (0, 0, 0)),
            ],
            out_specs=pl.BlockSpec((None, TH, W, G), lambda n, h: (n, h, 0, 0)),
            scratch_shapes=[pltpu.VMEM((TH + 2, W + 2, Cint), jnp.bfloat16)],
        ),
        compiler_params=pltpu.CompilerParams(
            dimension_semantics=("parallel", "parallel"),
            vmem_limit_bytes=vmem_limit),
    )(x_pad, w1f, w2f, s1, b1, b2)


def bottleneck_block_nhwc(x_nhwc, params, *, tile_h=8):
    """Standalone PyTorch-equivalent API: (N,H,W,Cin) -> (N,H,W,Cin+G)."""
    new = bottleneck_new_features_nhwc(x_nhwc, params, tile_h=tile_h)
    # x passes through bit-exactly (matches torch.cat([x, out], 1)).  In a
    # stacked dense block, skip this concat and append into a preallocated
    # feature buffer at the caller instead.
    return jnp.concatenate([x_nhwc, new.astype(x_nhwc.dtype)], axis=-1)


def bottleneck_block(x_nchw, params, *, tile_h=8):
    """PyTorch-layout wrapper: (N, Cin, H, W) -> (N, Cin+G, H, W).
    Keep NHWC end-to-end when stacking blocks; transpose only at model edges."""
    x_nhwc = jnp.transpose(x_nchw, (0, 2, 3, 1))
    out_nhwc = bottleneck_block_nhwc(x_nhwc, params, tile_h=tile_h)
    return jnp.transpose(out_nhwc, (0, 3, 1, 2))


def reference_nchw(x, params):
    """Pure-JAX f32 reference of the PyTorch forward (inference)."""
    eps = 1e-5
    s1 = params["gamma1"] / jnp.sqrt(params["var1"] + eps)
    b1 = params["beta1"] - params["mean1"] * s1
    s2 = params["gamma2"] / jnp.sqrt(params["var2"] + eps)
    b2 = params["beta2"] - params["mean2"] * s2
    a = jnp.maximum(x * s1[None, :, None, None] + b1[None, :, None, None], 0.0)
    h = jnp.einsum("nchw,cd->ndhw", a, params["w1"])
    h = jnp.maximum(h * s2[None, :, None, None] + b2[None, :, None, None], 0.0)
    out = lax.conv_general_dilated(
        h, params["w2"], window_strides=(1, 1), padding=((1, 1), (1, 1)),
        dimension_numbers=("NCHW", "HWIO", "NCHW"))
    return jnp.concatenate([x, out], axis=1)


def make_params(key, input_size, growth_rate, num_bn=3):
    inter_size = num_bn * growth_rate
    ks = jax.random.split(key, 8)
    params = {
        # conv1: PyTorch weight (Cout, Cin, 1, 1) -> store as (Cin, Cout) matmul
        "w1": 0.1 * jax.random.normal(ks[0], (input_size, inter_size), jnp.float32),
        # conv2: PyTorch weight (G, Cint, 3, 3) -> store HWIO (3, 3, Cint, G)
        "w2": 0.1 * jax.random.normal(ks[1], (3, 3, inter_size, growth_rate), jnp.float32),
        "gamma1": 1.0 + 0.05 * jax.random.normal(ks[2], (input_size,), jnp.float32),
        "beta1": 0.05 * jax.random.normal(ks[3], (input_size,), jnp.float32),
        "mean1": 0.1 * jax.random.normal(ks[4], (input_size,), jnp.float32),
        "var1": jnp.abs(0.5 + 0.1 * jax.random.normal(ks[5], (input_size,), jnp.float32)),
        "gamma2": 1.0 + 0.05 * jax.random.normal(ks[6], (inter_size,), jnp.float32),
        "beta2": 0.05 * jax.random.normal(ks[7], (inter_size,), jnp.float32),
        "mean2": jnp.zeros((inter_size,), jnp.float32),
        "var2": jnp.ones((inter_size,), jnp.float32),
    }
    return params


if __name__ == "__main__":
    key = jax.random.PRNGKey(0)
    k_x, k_p = jax.random.split(key)

    N, Cin, H, W = 2, 4, 16, 16
    growth_rate = 4
    x = jax.random.normal(k_x, (N, Cin, H, W), jnp.float32)   # NCHW like PyTorch
    params = make_params(k_p, Cin, growth_rate, num_bn=3)

    out = bottleneck_block(x, params, tile_h=8)   # 2 h-tiles -> exercises halo path
    out = jax.block_until_ready(out)
    assert out.shape == (N, Cin + growth_rate, H, W), out.shape

    # Loose tolerance: bf16 activation I/O + bf16 MXU operands (f32 accumulation).
    ref = reference_nchw(x, params)
    assert jnp.allclose(out.astype(jnp.float32), ref, atol=5e-2, rtol=5e-2), float(
        jnp.max(jnp.abs(out.astype(jnp.float32) - ref)))

    print("KERNEL_OK")
</pallas_src>

<mosaic_0001>
module attributes {stable_mosaic.version = 11 : i64} {
  func.func @bottleneck_kernel(%arg0: i32, %arg1: i32, %arg2: memref<1x18x16x4xbf16, #tpu.memory_space<vmem>>, %arg3: memref<4x12xbf16, #tpu.memory_space<vmem>>, %arg4: memref<3x3x12x4xbf16, #tpu.memory_space<vmem>>, %arg5: memref<1x1x4xf32, #tpu.memory_space<vmem>>, %arg6: memref<1x1x4xf32, #tpu.memory_space<vmem>>, %arg7: memref<1x1x12xf32, #tpu.memory_space<vmem>>, %arg8: memref<1x8x16x4xbf16, #tpu.memory_space<vmem>>, %arg9: memref<10x18x12xbf16, #tpu.memory_space<vmem>>) attributes {dimension_semantics = [#tpu.dimension_semantics<parallel>, #tpu.dimension_semantics<parallel>], iteration_bounds = array<i64: 2, 2>, scalar_prefetch = 0 : i64, scratch_operands = 1 : i64, tpu.core_type = #tpu.core_type<tc>, window_params = [{transform_indices = @transform_0, window_bounds = array<i64: 1, 18, 16, 4>}, {pipeline_mode = #tpu.pipeline_mode<synchronous>, transform_indices = @transform_1, window_bounds = array<i64: 4, 12>}, {pipeline_mode = #tpu.pipeline_mode<synchronous>, transform_indices = @transform_2, window_bounds = array<i64: 3, 3, 12, 4>}, {pipeline_mode = #tpu.pipeline_mode<synchronous>, transform_indices = @transform_3, window_bounds = array<i64: 1, 1, 4>}, {pipeline_mode = #tpu.pipeline_mode<synchronous>, transform_indices = @transform_4, window_bounds = array<i64: 1, 1, 4>}, {pipeline_mode = #tpu.pipeline_mode<synchronous>, transform_indices = @transform_5, window_bounds = array<i64: 1, 1, 12>}, {transform_indices = @transform_6, window_bounds = array<i64: 1, 8, 16, 4>}]} {
    %c8_i32 = arith.constant 8 : i32
    %0 = arith.muli %arg1, %c8_i32 : i32
    %1 = tpu.assume_multiple %0, 8 : i32
    %c0 = arith.constant 0 : index
    %2 = arith.index_cast %1 : i32 to index
    %c0_0 = arith.constant 0 : index
    %c0_1 = arith.constant 0 : index
    %3 = vector.load %arg2[%c0, %2, %c0_0, %c0_1] : memref<1x18x16x4xbf16, #tpu.memory_space<vmem>>, vector<1x10x16x4xbf16>
    %4 = vector.shape_cast %3 : vector<1x10x16x4xbf16> to vector<10x16x4xbf16>
    %5 = arith.extf %4 : vector<10x16x4xbf16> to vector<10x16x4xf32>
    %c0_2 = arith.constant 0 : index
    %c0_3 = arith.constant 0 : index
    %c0_4 = arith.constant 0 : index
    %6 = vector.load %arg5[%c0_2, %c0_3, %c0_4] : memref<1x1x4xf32, #tpu.memory_space<vmem>>, vector<1x1x4xf32>
    %7 = vector.broadcast %6 : vector<1x1x4xf32> to vector<10x16x4xf32>
    %8 = arith.mulf %5, %7 : vector<10x16x4xf32>
    %c0_5 = arith.constant 0 : index
    %c0_6 = arith.constant 0 : index
    %c0_7 = arith.constant 0 : index
    %9 = vector.load %arg6[%c0_5, %c0_6, %c0_7] : memref<1x1x4xf32, #tpu.memory_space<vmem>>, vector<1x1x4xf32>
    %10 = vector.broadcast %9 : vector<1x1x4xf32> to vector<10x16x4xf32>
    %11 = arith.addf %8, %10 : vector<10x16x4xf32>
    %cst = arith.constant 0.000000e+00 : f32
    %12 = vector.broadcast %cst : f32 to vector<10x16x4xf32>
    %13 = arith.maximumf %11, %12 : vector<10x16x4xf32>
    %14 = arith.truncf %13 : vector<10x16x4xf32> to vector<10x16x4xbf16>
    %c0_8 = arith.constant 0 : index
    %c0_9 = arith.constant 0 : index
    %15 = vector.load %arg3[%c0_8, %c0_9] : memref<4x12xbf16, #tpu.memory_space<vmem>>, vector<4x12xbf16>
    %cst_10 = arith.constant dense<0.000000e+00> : vector<10x16x12xf32>
    %16 = tpu.matmul %14, %15, %cst_10 {dimension_numbers = #tpu.dot_dimension_numbers<[2], [0], [0, 1], [1], [0, 0, 0, 1, 1, 1], [], []>} : vector<10x16x4xbf16>, vector<4x12xbf16>, vector<10x16x12xf32> -> vector<10x16x12xf32>
    %c0_11 = arith.constant 0 : index
    %c0_12 = arith.constant 0 : index
    %c0_13 = arith.constant 0 : index
    %17 = vector.load %arg7[%c0_11, %c0_12, %c0_13] : memref<1x1x12xf32, #tpu.memory_space<vmem>>, vector<1x1x12xf32>
    %18 = vector.broadcast %17 : vector<1x1x12xf32> to vector<10x16x12xf32>
    %19 = arith.addf %16, %18 : vector<10x16x12xf32>
    %cst_14 = arith.constant 0.000000e+00 : f32
    %20 = vector.broadcast %cst_14 : f32 to vector<10x16x12xf32>
    %21 = arith.maximumf %19, %20 : vector<10x16x12xf32>
    %22 = arith.truncf %21 : vector<10x16x12xf32> to vector<10x16x12xbf16>
    %c0_15 = arith.constant 0 : index
    %c1 = arith.constant 1 : index
    %c0_16 = arith.constant 0 : index
    %23 = vector.load %arg9[%c0_15, %c1, %c0_16] : memref<10x18x12xbf16, #tpu.memory_space<vmem>>, vector<10x16x12xbf16>
    tpu.vector_store %arg9[%c0_15, %c1, %c0_16], %22 {strides = array<i32>} : memref<10x18x12xbf16, #tpu.memory_space<vmem>>, vector<10x16x12xbf16>,
    %cst_17 = arith.constant 0.000000e+00 : bf16
    %24 = vector.broadcast %cst_17 : bf16 to vector<10x1x12xbf16>
    %c0_18 = arith.constant 0 : index
    %c0_19 = arith.constant 0 : index
    %c0_20 = arith.constant 0 : index
    %25 = vector.load %arg9[%c0_18, %c0_19, %c0_20] : memref<10x18x12xbf16, #tpu.memory_space<vmem>>, vector<10x1x12xbf16>
    tpu.vector_store %arg9[%c0_18, %c0_19, %c0_20], %24 {strides = array<i32>} : memref<10x18x12xbf16, #tpu.memory_space<vmem>>, vector<10x1x12xbf16>,
    %c0_21 = arith.constant 0 : index
    %c17 = arith.constant 17 : index
    %c0_22 = arith.constant 0 : index
    %26 = vector.load %arg9[%c0_21, %c17, %c0_22] : memref<10x18x12xbf16, #tpu.memory_space<vmem>>, vector<10x1x12xbf16>
    tpu.vector_store %arg9[%c0_21, %c17, %c0_22], %24 {strides = array<i32>} : memref<10x18x12xbf16, #tpu.memory_space<vmem>>, vector<10x1x12xbf16>,
    %cst_23 = arith.constant 0.000000e+00 : bf16
    %27 = vector.broadcast %cst_23 : bf16 to vector<1x18x12xbf16>
    %c0_i32 = arith.constant 0 : i32
    %28 = arith.cmpi eq, %arg1, %c0_i32 : i32
    %29 = arith.extui %28 : i1 to i32
    %c0_i32_24 = arith.constant 0 : i32
    %30 = arith.cmpi ne, %29, %c0_i32_24 : i32
    scf.if %30 {
      %c0_102 = arith.constant 0 : index
      %c0_103 = arith.constant 0 : index
      %c0_104 = arith.constant 0 : index
      %84 = vector.load %arg9[%c0_102, %c0_103, %c0_104] : memref<10x18x12xbf16, #tpu.memory_space<vmem>>, vector<1x18x12xbf16>
      tpu.vector_store %arg9[%c0_102, %c0_103, %c0_104], %27 {strides = array<i32>} : memref<10x18x12xbf16, #tpu.memory_space<vmem>>, vector<1x18x12xbf16>,
    } else {
    }
    %c1_i32 = arith.constant 1 : i32
    %31 = arith.cmpi eq, %arg1, %c1_i32 : i32
    %32 = arith.extui %31 : i1 to i32
    %c0_i32_25 = arith.constant 0 : i32
    %33 = arith.cmpi ne, %32, %c0_i32_25 : i32
    scf.if %33 {
      %c9 = arith.constant 9 : index
      %c0_102 = arith.constant 0 : index
      %c0_103 = arith.constant 0 : index
      %84 = vector.load %arg9[%c9, %c0_102, %c0_103] : memref<10x18x12xbf16, #tpu.memory_space<vmem>>, vector<1x18x12xbf16>
      tpu.vector_store %arg9[%c9, %c0_102, %c0_103], %27 {strides = array<i32>} : memref<10x18x12xbf16, #tpu.memory_space<vmem>>, vector<1x18x12xbf16>,
    } else {
    }
    %cst_26 = arith.constant 0.000000e+00 : f32
    %34 = vector.broadcast %cst_26 : f32 to vector<8x16x4xf32>
    %c0_27 = arith.constant 0 : index
    %c0_28 = arith.constant 0 : index
    %c0_29 = arith.constant 0 : index
    %35 = vector.load %arg9[%c0_27, %c0_28, %c0_29] : memref<10x18x12xbf16, #tpu.memory_space<vmem>>, vector<8x16x12xbf16>
    %c0_30 = arith.constant 0 : index
    %c0_31 = arith.constant 0 : index
    %c0_32 = arith.constant 0 : index
    %c0_33 = arith.constant 0 : index
    %36 = vector.load %arg4[%c0_30, %c0_31, %c0_32, %c0_33] : memref<3x3x12x4xbf16, #tpu.memory_space<vmem>>, vector<1x1x12x4xbf16>
    %37 = vector.shape_cast %36 : vector<1x1x12x4xbf16> to vector<12x4xbf16>
    %cst_34 = arith.constant dense<0.000000e+00> : vector<8x16x4xf32>
    %38 = tpu.matmul %35, %37, %cst_34 {dimension_numbers = #tpu.dot_dimension_numbers<[2], [0], [0, 1], [1], [0, 0, 0, 1, 1, 1], [], []>} : vector<8x16x12xbf16>, vector<12x4xbf16>, vector<8x16x4xf32> -> vector<8x16x4xf32>
    %39 = arith.addf %34, %38 : vector<8x16x4xf32>
    %c0_35 = arith.constant 0 : index
    %c1_36 = arith.constant 1 : index
    %c0_37 = arith.constant 0 : index
    %40 = vector.load %arg9[%c0_35, %c1_36, %c0_37] : memref<10x18x12xbf16, #tpu.memory_space<vmem>>, vector<8x16x12xbf16>
    %c0_38 = arith.constant 0 : index
    %c1_39 = arith.constant 1 : index
    %c0_40 = arith.constant 0 : index
    %c0_41 = arith.constant 0 : index
    %41 = vector.load %arg4[%c0_38, %c1_39, %c0_40, %c0_41] : memref<3x3x12x4xbf16, #tpu.memory_space<vmem>>, vector<1x1x12x4xbf16>
    %42 = vector.shape_cast %41 : vector<1x1x12x4xbf16> to vector<12x4xbf16>
    %cst_42 = arith.constant dense<0.000000e+00> : vector<8x16x4xf32>
    %43 = tpu.matmul %40, %42, %cst_42 {dimension_numbers = #tpu.dot_dimension_numbers<[2], [0], [0, 1], [1], [0, 0, 0, 1, 1, 1], [], []>} : vector<8x16x12xbf16>, vector<12x4xbf16>, vector<8x16x4xf32> -> vector<8x16x4xf32>
    %44 = arith.addf %39, %43 : vector<8x16x4xf32>
    %c0_43 = arith.constant 0 : index
    %c2 = arith.constant 2 : index
    %c0_44 = arith.constant 0 : index
    %45 = vector.load %arg9[%c0_43, %c2, %c0_44] : memref<10x18x12xbf16, #tpu.memory_space<vmem>>, vector<8x16x12xbf16>
    %c0_45 = arith.constant 0 : index
    %c2_46 = arith.constant 2 : index
    %c0_47 = arith.constant 0 : index
    %c0_48 = arith.constant 0 : index
    %46 = vector.load %arg4[%c0_45, %c2_46, %c0_47, %c0_48] : memref<3x3x12x4xbf16, #tpu.memory_space<vmem>>, vector<1x1x12x4xbf16>
    %47 = vector.shape_cast %46 : vector<1x1x12x4xbf16> to vector<12x4xbf16>
    %cst_49 = arith.constant dense<0.000000e+00> : vector<8x16x4xf32>
    %48 = tpu.matmul %45, %47, %cst_49 {dimension_numbers = #tpu.dot_dimension_numbers<[2], [0], [0, 1], [1], [0, 0, 0, 1, 1, 1], [], []>} : vector<8x16x12xbf16>, vector<12x4xbf16>, vector<8x16x4xf32> -> vector<8x16x4xf32>
    %49 = arith.addf %44, %48 : vector<8x16x4xf32>
    %c1_50 = arith.constant 1 : index
    %c0_51 = arith.constant 0 : index
    %c0_52 = arith.constant 0 : index
    %50 = vector.load %arg9[%c1_50, %c0_51, %c0_52] : memref<10x18x12xbf16, #tpu.memory_space<vmem>>, vector<8x16x12xbf16>
    %c1_53 = arith.constant 1 : index
    %c0_54 = arith.constant 0 : index
    %c0_55 = arith.constant 0 : index
    %c0_56 = arith.constant 0 : index
    %51 = vector.load %arg4[%c1_53, %c0_54, %c0_55, %c0_56] : memref<3x3x12x4xbf16, #tpu.memory_space<vmem>>, vector<1x1x12x4xbf16>
    %52 = vector.shape_cast %51 : vector<1x1x12x4xbf16> to vector<12x4xbf16>
    %cst_57 = arith.constant dense<0.000000e+00> : vector<8x16x4xf32>
    %53 = tpu.matmul %50, %52, %cst_57 {dimension_numbers = #tpu.dot_dimension_numbers<[2], [0], [0, 1], [1], [0, 0, 0, 1, 1, 1], [], []>} : vector<8x16x12xbf16>, vector<12x4xbf16>, vector<8x16x4xf32> -> vector<8x16x4xf32>
    %54 = arith.addf %49, %53 : vector<8x16x4xf32>
    %c1_58 = arith.constant 1 : index
    %c1_59 = arith.constant 1 : index
    %c0_60 = arith.constant 0 : index
    %55 = vector.load %arg9[%c1_58, %c1_59, %c0_60] : memref<10x18x12xbf16, #tpu.memory_space<vmem>>, vector<8x16x12xbf16>
    %c1_61 = arith.constant 1 : index
    %c1_62 = arith.constant 1 : index
    %c0_63 = arith.constant 0 : index
    %c0_64 = arith.constant 0 : index
    %56 = vector.load %arg4[%c1_61, %c1_62, %c0_63, %c0_64] : memref<3x3x12x4xbf16, #tpu.memory_space<vmem>>, vector<1x1x12x4xbf16>
    %57 = vector.shape_cast %56 : vector<1x1x12x4xbf16> to vector<12x4xbf16>
    %cst_65 = arith.constant dense<0.000000e+00> : vector<8x16x4xf32>
    %58 = tpu.matmul %55, %57, %cst_65 {dimension_numbers = #tpu.dot_dimension_numbers<[2], [0], [0, 1], [1], [0, 0, 0, 1, 1, 1], [], []>} : vector<8x16x12xbf16>, vector<12x4xbf16>, vector<8x16x4xf32> -> vector<8x16x4xf32>
    %59 = arith.addf %54, %58 : vector<8x16x4xf32>
    %c1_66 = arith.constant 1 : index
    %c2_67 = arith.constant 2 : index
    %c0_68 = arith.constant 0 : index
    %60 = vector.load %arg9[%c1_66, %c2_67, %c0_68] : memref<10x18x12xbf16, #tpu.memory_space<vmem>>, vector<8x16x12xbf16>
    %c1_69 = arith.constant 1 : index
    %c2_70 = arith.constant 2 : index
    %c0_71 = arith.constant 0 : index
    %c0_72 = arith.constant 0 : index
    %61 = vector.load %arg4[%c1_69, %c2_70, %c0_71, %c0_72] : memref<3x3x12x4xbf16, #tpu.memory_space<vmem>>, vector<1x1x12x4xbf16>
    %62 = vector.shape_cast %61 : vector<1x1x12x4xbf16> to vector<12x4xbf16>
    %cst_73 = arith.constant dense<0.000000e+00> : vector<8x16x4xf32>
    %63 = tpu.matmul %60, %62, %cst_73 {dimension_numbers = #tpu.dot_dimension_numbers<[2], [0], [0, 1], [1], [0, 0, 0, 1, 1, 1], [], []>} : vector<8x16x12xbf16>, vector<12x4xbf16>, vector<8x16x4xf32> -> vector<8x16x4xf32>
    %64 = arith.addf %59, %63 : vector<8x16x4xf32>
    %c2_74 = arith.constant 2 : index
    %c0_75 = arith.constant 0 : index
    %c0_76 = arith.constant 0 : index
    %65 = vector.load %arg9[%c2_74, %c0_75, %c0_76] : memref<10x18x12xbf16, #tpu.memory_space<vmem>>, vector<8x16x12xbf16>
    %c2_77 = arith.constant 2 : index
    %c0_78 = arith.constant 0 : index
    %c0_79 = arith.constant 0 : index
    %c0_80 = arith.constant 0 : index
    %66 = vector.load %arg4[%c2_77, %c0_78, %c0_79, %c0_80] : memref<3x3x12x4xbf16, #tpu.memory_space<vmem>>, vector<1x1x12x4xbf16>
    %67 = vector.shape_cast %66 : vector<1x1x12x4xbf16> to vector<12x4xbf16>
    %cst_81 = arith.constant dense<0.000000e+00> : vector<8x16x4xf32>
    %68 = tpu.matmul %65, %67, %cst_81 {dimension_numbers = #tpu.dot_dimension_numbers<[2], [0], [0, 1], [1], [0, 0, 0, 1, 1, 1], [], []>} : vector<8x16x12xbf16>, vector<12x4xbf16>, vector<8x16x4xf32> -> vector<8x16x4xf32>
    %69 = arith.addf %64, %68 : vector<8x16x4xf32>
    %c2_82 = arith.constant 2 : index
    %c1_83 = arith.constant 1 : index
    %c0_84 = arith.constant 0 : index
    %70 = vector.load %arg9[%c2_82, %c1_83, %c0_84] : memref<10x18x12xbf16, #tpu.memory_space<vmem>>, vector<8x16x12xbf16>
    %c2_85 = arith.constant 2 : index
    %c1_86 = arith.constant 1 : index
    %c0_87 = arith.constant 0 : index
    %c0_88 = arith.constant 0 : index
    %71 = vector.load %arg4[%c2_85, %c1_86, %c0_87, %c0_88] : memref<3x3x12x4xbf16, #tpu.memory_space<vmem>>, vector<1x1x12x4xbf16>
    %72 = vector.shape_cast %71 : vector<1x1x12x4xbf16> to vector<12x4xbf16>
    %cst_89 = arith.constant dense<0.000000e+00> : vector<8x16x4xf32>
    %73 = tpu.matmul %70, %72, %cst_89 {dimension_numbers = #tpu.dot_dimension_numbers<[2], [0], [0, 1], [1], [0, 0, 0, 1, 1, 1], [], []>} : vector<8x16x12xbf16>, vector<12x4xbf16>, vector<8x16x4xf32> -> vector<8x16x4xf32>
    %74 = arith.addf %69, %73 : vector<8x16x4xf32>
    %c2_90 = arith.constant 2 : index
    %c2_91 = arith.constant 2 : index
    %c0_92 = arith.constant 0 : index
    %75 = vector.load %arg9[%c2_90, %c2_91, %c0_92] : memref<10x18x12xbf16, #tpu.memory_space<vmem>>, vector<8x16x12xbf16>
    %c2_93 = arith.constant 2 : index
    %c2_94 = arith.constant 2 : index
    %c0_95 = arith.constant 0 : index
    %c0_96 = arith.constant 0 : index
    %76 = vector.load %arg4[%c2_93, %c2_94, %c0_95, %c0_96] : memref<3x3x12x4xbf16, #tpu.memory_space<vmem>>, vector<1x1x12x4xbf16>
    %77 = vector.shape_cast %76 : vector<1x1x12x4xbf16> to vector<12x4xbf16>
    %cst_97 = arith.constant dense<0.000000e+00> : vector<8x16x4xf32>
    %78 = tpu.matmul %75, %77, %cst_97 {dimension_numbers = #tpu.dot_dimension_numbers<[2], [0], [0, 1], [1], [0, 0, 0, 1, 1, 1], [], []>} : vector<8x16x12xbf16>, vector<12x4xbf16>, vector<8x16x4xf32> -> vector<8x16x4xf32>
    %79 = arith.addf %74, %78 : vector<8x16x4xf32>
    %80 = arith.truncf %79 : vector<8x16x4xf32> to vector<8x16x4xbf16>
    %c0_98 = arith.constant 0 : index
    %c0_99 = arith.constant 0 : index
    %c0_100 = arith.constant 0 : index
    %c0_101 = arith.constant 0 : index
    %81 = vector.load %arg8[%c0_98, %c0_99, %c0_100, %c0_101] : memref<1x8x16x4xbf16, #tpu.memory_space<vmem>>, vector<1x8x16x4xbf16>
    %82 = vector.shape_cast %81 : vector<1x8x16x4xbf16> to vector<8x16x4xbf16>
    %83 = vector.shape_cast %80 : vector<8x16x4xbf16> to vector<1x8x16x4xbf16>
    tpu.vector_store %arg8[%c0_98, %c0_99, %c0_100, %c0_101], %83 {strides = array<i32>} : memref<1x8x16x4xbf16, #tpu.memory_space<vmem>>, vector<1x8x16x4xbf16>,
    return
  }
  func.func @transform_0(%arg0: i32, %arg1: i32) -> (i32, i32, i32, i32) {
    %c0_i32 = arith.constant 0 : i32
    %c0_i32_0 = arith.constant 0 : i32
    %c0_i32_1 = arith.constant 0 : i32
    %c0_i32_2 = arith.constant 0 : i32
    return %arg0, %c0_i32, %c0_i32_0, %c0_i32_1 : i32, i32, i32, i32
  }
  func.func @transform_1(%arg0: i32, %arg1: i32) -> (i32, i32) {
    %c0_i32 = arith.constant 0 : i32
    %c0_i32_0 = arith.constant 0 : i32
    %c0_i32_1 = arith.constant 0 : i32
    return %c0_i32, %c0_i32_0 : i32, i32
  }
  func.func @transform_2(%arg0: i32, %arg1: i32) -> (i32, i32, i32, i32) {
    %c0_i32 = arith.constant 0 : i32
    %c0_i32_0 = arith.constant 0 : i32
    %c0_i32_1 = arith.constant 0 : i32
    %c0_i32_2 = arith.constant 0 : i32
    %c0_i32_3 = arith.constant 0 : i32
    return %c0_i32, %c0_i32_0, %c0_i32_1, %c0_i32_2 : i32, i32, i32, i32
  }
  func.func @transform_3(%arg0: i32, %arg1: i32) -> (i32, i32, i32) {
    %c0_i32 = arith.constant 0 : i32
    %c0_i32_0 = arith.constant 0 : i32
    %c0_i32_1 = arith.constant 0 : i32
    %c0_i32_2 = arith.constant 0 : i32
    return %c0_i32, %c0_i32_0, %c0_i32_1 : i32, i32, i32
  }
  func.func @transform_4(%arg0: i32, %arg1: i32) -> (i32, i32, i32) {
    %c0_i32 = arith.constant 0 : i32
    %c0_i32_0 = arith.constant 0 : i32
    %c0_i32_1 = arith.constant 0 : i32
    %c0_i32_2 = arith.constant 0 : i32
    return %c0_i32, %c0_i32_0, %c0_i32_1 : i32, i32, i32
  }
  func.func @transform_5(%arg0: i32, %arg1: i32) -> (i32, i32, i32) {
    %c0_i32 = arith.constant 0 : i32
    %c0_i32_0 = arith.constant 0 : i32
    %c0_i32_1 = arith.constant 0 : i32
    %c0_i32_2 = arith.constant 0 : i32
    return %c0_i32, %c0_i32_0, %c0_i32_1 : i32, i32, i32
  }
  func.func @transform_6(%arg0: i32, %arg1: i32) -> (i32, i32, i32, i32) {
    %c0_i32 = arith.constant 0 : i32
    %c0_i32_0 = arith.constant 0 : i32
    %c0_i32_1 = arith.constant 0 : i32
    return %arg0, %arg1, %c0_i32, %c0_i32_0 : i32, i32, i32, i32
  }
}

</mosaic_0001>

<bundles_post_ra>
// kernel: tpu_custom_call.1
= control target key start
LH: loop header
LB: loop body
LE: loop exit
PB: predicated region body
PF: predicated region fallthrough
CT: control target
= control target key end

     0   :  { %s4466_s21 = smov 0   ;;  %s4468_s22 = smov 0   ;;  %s5737_s0 = inlined_call_operand.vmem [shape: bf16[2,18,16,4], index: 0, kind: input, shape index: {}]   ;;  %s5738_s1 = inlined_call_operand.vmem [shape: bf16[4,12], index: 1, kind: input, shape index: {}]   ;;  %s5739_s2 = inlined_call_operand.vmem [shape: bf16[3,3,12,4], index: 2, kind: input, shape index: {}]   ;;  %s5740_s3 = inlined_call_operand.vmem [shape: f32[1,1,4], index: 3, kind: input, shape index: {}]   ;;  %s5741_s4 = inlined_call_operand.vmem [shape: f32[1,1,4], index: 4, kind: input, shape index: {}]   ;;  %s5742_s5 = inlined_call_operand.vmem [shape: f32[1,1,12], index: 5, kind: input, shape index: {}]   ;;  %s5743_s6 = inlined_call_operand.vmem [shape: bf16[2,16,16,4], index: 6, kind: output, shape index: {}]  }
   0x1   :  { %s4470_s23 = smov 0   ;;  %s4472_s24 = smov 0  }
   0x2   :  { %s4474_s25 = smov 0  }
   0x3 LB: > { %s25_s26 = sadd.s32 1, %s4419_s23  ;;  %s28_s27 = sadd.s32 1, %s4423_s24  ;;  %s4427_s25 = sphi %s4474_s25, %s16_s25   ;;  %s4423_s24 = sphi %s4472_s24, %s5807_s24   ;;  %s4419_s23 = sphi %s4470_s23, %s5806_s23   ;;  %s4415_s22 = sphi %s4468_s22, %s5805_s22   ;;  %s4411_s21 = sphi %s4466_s21, %s5804_s21  }
   0x4   : > { %p26_p0 = scmp.ge.s32.totalorder %s25_s26, 2  ;;  %p3685_p1 = scmp.ge.s32.totalorder %s4427_s25, 1 }
   0x5   : > { %p226_p2 = scmp.lt.s32.totalorder %s4427_s25, 5 }
   0x6   : > { %s5809_s26 = smov (%p26_p0, %s25_s26), 0  ;;  %s5811_s27 = smov (!%p26_p0, %s28_s27), %s4423_s24 }
   0x7   : > { %p227_p3 = pnand %p3685_p1, %p226_p2  ;;  %p30_p4 = scmp.ge.s32.totalorder %s5811_s27, 2 }
   0x9   : > { %s5813_s27 = smov (%p30_p4, %s5811_s27), 0  ;;  %230 = sbr.rel (%p227_p3) target bundleno = 691 (0x2b3), region = 44 }
   0xe   : > { %v406_v0 = vld [vmem:[%s5738_s1] sm:$0x3]  ;;  %vm445_vm0 = vcmask 1041408   ;;  %p261_p5 = scmp.lt.s32.totalorder %s4415_s22, 1  ;;  %s3687_s30 = sshll.u32 %s4411_s21, 3  ;;  %vm414_vm1 = vcmask 31744  }
   0xf   : > { %4303 = vmatprep.subr.msk.bf16.mxu0 %vm445_vm0, %v406_v0  ;;  %v447_v1 = vsel %vm445_vm0, %v406_v0, 0  ;;  %p269_p6 = scmp.lt.s32.totalorder %s3687_s30, 15  ;;  %s3941_s7 = sshll.u32 %s4411_s21, 6  ;;  %v4511_v2 = vld [vmem:[%s5740_s3] ss:$0 sm:$0xff]  ;;  %vm845_vm2 = vcmask 93184  }
  0x10   : > { %4120 = vmatpush3.bf16.msra.mxu0 %v447_v1  ;;  %s5815_s22 = smov (!%p261_p5, %s4415_s22), 1  ;;  %v4525_v11 = vld [vmem:[%s5741_s4] ss:$0 sm:$0xff]  ;;  %vm846_vm3 = vsmask.f32 7938  ;;  %vm853_vm5 = vcmask 90112  }
  0x11   : > { %s5817_s30 = smov (!%p269_p6, %s3687_s30), 15  ;;  %s4313_s8 = smul.u32 144, %s5815_s22  ;;  %vm642_vm4 = vsmask.f32 256  ;;  %vm4594_vm6 = vmand %vm845_vm2, %vm846_vm3  ;;  %vm643_vm7 = vsmask.f32 4368 }
  0x12   : > { %s3689_s9 = sshll.u32 %s5815_s22, 5  ;;  %s3688_s10 = sshll.u32 %s5817_s30, 1  ;;  %vm4602_vm8 = vmand %vm853_vm5, %vm642_vm4 }
  0x13   : > { %s265_s13 = scalar_lea.vmem %s5737_s0, %s4313_s8  ;;  %s273_s14 = sadd.s32 %s3689_s9, %s3688_s10  ;;  %vm4610_vm9 = vmor %vm642_vm4, %vm643_vm7 }
  0x14   : > { %s3690_s15 = sshll.u32 %s273_s14, 2  ;;  %s4506_s16 = scalar_lea.vmem %s265_s13, %s3941_s7  ;;  %vm4636_vm10 = vmand %vm853_vm5, %vm846_vm3 }
  0x15   : > { %s4516_s22 = scalar_lea.vmem %s5743_s6, %s3690_s15  ;;  %v3979_v3 = vld [vmem:[%s4506_s16] sm:$0xff]   ;;  %v4018_v4 = vld [vmem:[%s4506_s16 + $0x8] sm:$0xff]   ;;  %v4019_v5 = vld [vmem:[%s4506_s16 + $0x10] sm:$0xff]   ;;  %p3727_p7 = scmp.ne.s32.totalorder %s4411_s21, 0 }
  0x16   : > { %v3980_v6 = vunpack.c.l.bf16 %v3979_v3  ;;  %v3981_v7 = vunpack.c.h.bf16 %v3979_v3  ;;  %v3984_v8 = vunpack.c.l.bf16 %v4018_v4  ;;  %v3985_v9 = vunpack.c.h.bf16 %v4018_v4  ;;  %v4020_v10 = vld [vmem:[%s4506_s16 + $0x18] sm:$0xff]   ;;  %v4021_v30 = vld [vmem:[%s4506_s16 + $0x20] sm:$0xff]   ;;  %v4022_v35 = vld [vmem:[%s4506_s16 + $0x28] sm:$0xff]  }
  0x17   : > { %v3988_v12 = vunpack.c.l.bf16 %v4019_v5  ;;  %v3989_v13 = vunpack.c.h.bf16 %v4019_v5  ;;  %v3992_v14 = vunpack.c.l.bf16 %v4020_v10  ;;  %v3993_v15 = vunpack.c.h.bf16 %v4020_v10  ;;  %v4023_v40 = vld [vmem:[%s4506_s16 + $0x30] sm:$0xff]   ;;  %v4024_v56 = vld [vmem:[%s4506_s16 + $0x38] sm:$0xff]   ;;  %v4025_v61 = vld [vmem:[%s4506_s16 + $0x40] sm:$0xff]  }
  0x18   : > { %v329_v16 = vmul.f32 %v3980_v6, %v4511_v2  ;;  %v330_v17 = vmul.f32 %v3981_v7, %v4511_v2  ;;  %v331_v18 = vmul.f32 %v3984_v8, %v4511_v2  ;;  %v332_v19 = vmul.f32 %v3985_v9, %v4511_v2 }
  0x19   : > { %v333_v20 = vmul.f32 %v3988_v12, %v4511_v2  ;;  %v334_v21 = vmul.f32 %v3989_v13, %v4511_v2  ;;  %v335_v22 = vmul.f32 %v3992_v14, %v4511_v2  ;;  %v336_v23 = vmul.f32 %v3993_v15, %v4511_v2 }
  0x1a   : > { %v356_v24 = vadd.f32 %v4525_v11, %v329_v16  ;;  %v357_v25 = vadd.f32 %v4525_v11, %v330_v17  ;;  %v358_v26 = vadd.f32 %v4525_v11, %v331_v18  ;;  %v359_v27 = vadd.f32 %v4525_v11, %v332_v19 }
  0x1b   : > { %v360_v28 = vadd.f32 %v4525_v11, %v333_v20  ;;  %v361_v29 = vadd.f32 %v4525_v11, %v334_v21  ;;  %v362_v38 = vadd.f32 %v4525_v11, %v335_v22  ;;  %v363_v39 = vadd.f32 %v4525_v11, %v336_v23  ;;  %v4026_v20 = vld [vmem:[%s4506_s16 + $0x48] sm:$0xff]  }
  0x1c   : > { %v376_v31 = vmax.f32 %v356_v24, 0.0  ;;  %v377_v32 = vmax.f32 %v357_v25, 0.0  ;;  %v378_v33 = vmax.f32 %v358_v26, 0.0  ;;  %v379_v34 = vmax.f32 %v359_v27, 0.0 }
  0x1d   : > { %v380_v36 = vmax.f32 %v360_v28, 0.0  ;;  %v381_v37 = vmax.f32 %v361_v29, 0.0  ;;  %v3996_v43 = vunpack.c.l.bf16 %v4021_v30  ;;  %v3997_v44 = vunpack.c.h.bf16 %v4021_v30 }
  0x1e   : > { %v396_v41 = vpack.c.bf16 %v377_v32, %v376_v31  ;;  %v397_v42 = vpack.c.bf16 %v379_v34, %v378_v33  ;;  %v4000_v46 = vunpack.c.l.bf16 %v4022_v35  ;;  %v4001_v47 = vunpack.c.h.bf16 %v4022_v35 }
  0x1f   : > { %v398_v45 = vpack.c.bf16 %v381_v37, %v380_v36  ;;  %v337_v48 = vmul.f32 %v3996_v43, %v4511_v2  ;;  %v338_v49 = vmul.f32 %v3997_v44, %v4511_v2  ;;  %v4004_v50 = vunpack.c.l.bf16 %v4023_v40 }
  0x20   : > { %4121 = vmatprep.mubr.msk.bf16.mxu0 %vm414_vm1, %v396_v41  ;;  %v4005_v51 = vunpack.c.h.bf16 %v4023_v40  ;;  %v382_v52 = vmax.f32 %v362_v38, 0.0  ;;  %v383_v53 = vmax.f32 %v363_v39, 0.0  ;;  %v339_v54 = vmul.f32 %v4000_v46, %v4511_v2 }
  0x21   : > { %4122 = vmatmul.mubr.msk.bf16.vlgmr.msra.gmra.mxu0 %vm414_vm1, %v397_v42  ;;  %v340_v55 = vmul.f32 %v4001_v47, %v4511_v2  ;;  %v364_v57 = vadd.f32 %v4525_v11, %v337_v48  ;;  %v365_v58 = vadd.f32 %v4525_v11, %v338_v49  ;;  %v341_v59 = vmul.f32 %v4004_v50, %v4511_v2 }
  0x22   : > { %4125 = vmatprep.mubr.msk.bf16.mxu0 %vm414_vm1, %v398_v45  ;;  %v342_v60 = vmul.f32 %v4005_v51, %v4511_v2  ;;  %v4008_v0 = vunpack.c.l.bf16 %v4024_v56  ;;  %v399_v1 = vpack.c.bf16 %v383_v53, %v382_v52  ;;  %v366_v3 = vadd.f32 %v4525_v11, %v339_v54 }
  0x23   : > { %v384_v62 = vmax.f32 %v364_v57, 0.0  ;;  %v385_v63 = vmax.f32 %v365_v58, 0.0  ;;  %v367_v4 = vadd.f32 %v4525_v11, %v340_v55  ;;  %v4009_v5 = vunpack.c.h.bf16 %v4024_v56 }
  0x24   : > { %v368_v7 = vadd.f32 %v4525_v11, %v341_v59  ;;  %v369_v8 = vadd.f32 %v4525_v11, %v342_v60  ;;  %v4012_v9 = vunpack.c.l.bf16 %v4025_v61  ;;  %v4013_v10 = vunpack.c.h.bf16 %v4025_v61  ;;  %v858_v61 = vld [vmem:[#allocation2 + $0xc] sm:$0xf] }
  0x25   : > { %v400_v6 = vpack.c.bf16 %v385_v63, %v384_v62  ;;  %v343_v12 = vmul.f32 %v4008_v0, %v4511_v2  ;;  %v386_v13 = vmax.f32 %v366_v3, 0.0  ;;  %v387_v14 = vmax.f32 %v367_v4, 0.0 }
  0x26   : > { %v344_v15 = vmul.f32 %v4009_v5, %v4511_v2  ;;  %v388_v16 = vmax.f32 %v368_v7, 0.0  ;;  %v389_v17 = vmax.f32 %v369_v8, 0.0  ;;  %v345_v18 = vmul.f32 %v4012_v9, %v4511_v2  ;;  %v848_v7 = vld [vmem:[#allocation2] sm:$0xf] }
  0x27   : > { %v346_v19 = vmul.f32 %v4013_v10, %v4511_v2  ;;  %v370_v21 = vadd.f32 %v4525_v11, %v343_v12  ;;  %v401_v22 = vpack.c.bf16 %v387_v14, %v386_v13  ;;  %v4016_v24 = vunpack.c.l.bf16 %v4026_v20 }
  0x28   : > { %v371_v23 = vadd.f32 %v4525_v11, %v344_v15  ;;  %v4017_v25 = vunpack.c.h.bf16 %v4026_v20  ;;  %v402_v26 = vpack.c.bf16 %v389_v17, %v388_v16  ;;  %v372_v27 = vadd.f32 %v4525_v11, %v345_v18  ;;  %v862_v20 = vld [vmem:[#allocation2 + $0x14] sm:$0x1] }
  0x29   : > { %4126 = vmatmul.mubr.msk.bf16.gmra.mxu0 %vm414_vm1, %v399_v1  ;;  %v373_v28 = vadd.f32 %v4525_v11, %v346_v19  ;;  %v390_v29 = vmax.f32 %v370_v21, 0.0  ;;  %v347_v31 = vmul.f32 %v4016_v24, %v4511_v2 }
  0x2a   : > { %4129 = vmatprep.mubr.msk.bf16.mxu0 %vm414_vm1, %v400_v6  ;;  %v391_v30 = vmax.f32 %v371_v23, 0.0  ;;  %v348_v32 = vmul.f32 %v4017_v25, %v4511_v2  ;;  %v392_v33 = vmax.f32 %v372_v27, 0.0  ;;  %v4586_v2 = vld [vmem:[%s5742_s5] ss:$0 sm:$0xff] }
  0x2b   : > { %v393_v34 = vmax.f32 %v373_v28, 0.0  ;;  %v374_v36 = vadd.f32 %v4525_v11, %v347_v31 }
  0x2c   : > { %v403_v35 = vpack.c.bf16 %v391_v30, %v390_v29  ;;  %v375_v37 = vadd.f32 %v4525_v11, %v348_v32 }
  0x2d   : > { %v404_v38 = vpack.c.bf16 %v393_v34, %v392_v33  ;;  %v394_v39 = vmax.f32 %v374_v36, 0.0 }
  0x2e   : > { %v395_v40 = vmax.f32 %v375_v37, 0.0  ;;  %v855_v37 = vld [vmem:[#allocation2 + $0x8] sm:$0x1] }
  0x30   : > { %v405_v41 = vpack.c.bf16 %v395_v40, %v394_v39 }
  0x31   : > { %4130 = vmatmul.mubr.msk.bf16.gmra.mxu0 %vm414_vm1, %v401_v22 }
  0x32   : > { %4133 = vmatprep.mubr.msk.bf16.mxu0 %vm414_vm1, %v402_v26 }
  0x39   : > { %4134 = vmatmul.mubr.msk.bf16.gmra.mxu0 %vm414_vm1, %v403_v35 }
  0x3a   : > { %4137 = vmatprep.mubr.msk.bf16.mxu0 %vm414_vm1, %v404_v38 }
  0x41   : > { %4138 = vmatmul.mubr.msk.bf16.gmra.mxu0 %vm414_vm1, %v405_v41 }
  0xe1   : > { %v4123_v42 = vpop.f32.mrf.mxu0 }
  0xe2   : > { %v492_v43 = vadd.f32 %v4123_v42, %v4586_v2 }
  0xe3   : > { %v483_v44 = vpop.f32.mrf.mxu0 }
  0xe4   : > { %v564_v11 = vmax.f32 %v492_v43, 0.0  ;;  %v484_v45 = vadd.f32 %v4586_v2, %v483_v44 }
  0xe5   : > { %v4124_v46 = vpop.f32.mrf.mxu0 }
  0xe6   : > { %v3944_v47 = vpack.c.bf16 %v564_v11, %v564_v11  ;;  %v562_v48 = vmax.f32 %v484_v45, 0.0  ;;  %v495_v49 = vadd.f32 %v4124_v46, %v4586_v2  ;;  %v872_v11 = vld [vmem:[#allocation2 + $0x24] sm:$0xf] }
  0xe7   : > { %v486_v50 = vpop.f32.mrf.mxu0 }
  0xe8   : > { %v663_v51 = vshrl.u32 %v3944_v47, 16  ;;  %v3942_v52 = vpack.c.bf16 %v562_v48, %v562_v48  ;;  %v565_v53 = vmax.f32 %v495_v49, 0.0  ;;  %v487_v54 = vadd.f32 %v4586_v2, %v486_v50 }
  0xe9   : > { %v4127_v55 = vpop.f32.mrf.mxu0  ;;  %v666_v57 = vshll.u32 %v3944_v47, 16 }
  0xea   : > { %v665_v56 = vrot.slane %v663_v51, 7  ;;  %v646_v58 = vshrl.u32 %v3942_v52, 16  ;;  %v3945_v59 = vpack.c.bf16 %v565_v53, %v565_v53  ;;  %v649_v62 = vshll.u32 %v3942_v52, 16 }
  0xeb   : > { %v563_v63 = vmax.f32 %v487_v54, 0.0  ;;  %v508_v0 = vadd.f32 %v4127_v55, %v4586_v2  ;;  %v499_v1 = vpop.f32.mrf.mxu0 }
  0xec   : > { %v668_v3 = vor.u32 %v666_v57, %v665_v56  ;;  %v669_v4 = vrot.slane %v665_v56, 4  ;;  %v648_v5 = vrot.slane %v646_v58, 7  ;;  %v671_v6 = vshrl.u32 %v3945_v59, 16 }
  0xed   : > { %v674_v8 = vshll.u32 %v3945_v59, 16  ;;  %v3943_v9 = vpack.c.bf16 %v563_v63, %v563_v63  ;;  %v568_v10 = vmax.f32 %v508_v0, 0.0  ;;  %v500_v12 = vadd.f32 %v4586_v2, %v499_v1  ;;  %v4128_v13 = vpop.f32.mrf.mxu0 }
  0xee   : > { %v859_v15 = vsel %vm4594_vm6, %v668_v3, %v858_v61  ;;  %v651_v16 = vor.u32 %v649_v62, %v648_v5  ;;  %v652_v17 = vrot.slane %v648_v5, 4  ;;  %v673_v18 = vrot.slane %v671_v6, 7  ;;  %v865_v62 = vld [vmem:[#allocation2 + $0x18] sm:$0xf] }
  0xef   : > { %860 = vst [vmem:[#allocation2 + $0xc] sm:$0xf] %v859_v15  ;;  %v654_v21 = vshrl.u32 %v3943_v9, 16  ;;  %v657_v22 = vshll.u32 %v3943_v9, 16  ;;  %v3948_v23 = vpack.c.bf16 %v568_v10, %v568_v10  ;;  %v566_v24 = vmax.f32 %v500_v12, 0.0  ;;  %v502_v25 = vpop.f32.mrf.mxu0 }
  0xf0   : > { %v849_v26 = vsel %vm4594_vm6, %v651_v16, %v848_v7  ;;  %v676_v27 = vor.u32 %v674_v8, %v673_v18  ;;  %v678_v28 = vrot.slane %v673_v18, 4  ;;  %v511_v29 = vadd.f32 %v4128_v13, %v4586_v2  ;;  %v876_v10 = vld [vmem:[#allocation2 + $0x2c] sm:$0x1] }
  0xf1   : > { %850 = vst [vmem:[#allocation2] sm:$0xf] %v849_v26  ;;  %v656_v30 = vrot.slane %v654_v21, 7  ;;  %v697_v31 = vshrl.u32 %v3948_v23, 16  ;;  %v700_v32 = vshll.u32 %v3948_v23, 16  ;;  %v3946_v33 = vpack.c.bf16 %v566_v24, %v566_v24  ;;  %v4131_v34 = vpop.f32.mrf.mxu0 }
  0xf2   : > { %v677_v35 = vsel %vm4610_vm9, %v669_v4, %v676_v27  ;;  %v863_v36 = vsel %vm4602_vm8, %v678_v28, %v862_v20  ;;  %v569_v38 = vmax.f32 %v511_v29, 0.0  ;;  %v503_v39 = vadd.f32 %v4586_v2, %v502_v25  ;;  %v869_v24 = vld [vmem:[#allocation2 + $0x20] sm:$0x1] }
  0xf3   : > { %861 = vst.msk [vmem:[#allocation2 + $0x10] sm:$0xf] %vm845_vm2, %v677_v35  ;;  %864 = vst [vmem:[#allocation2 + $0x14] sm:$0x1] %v863_v36  ;;  %v659_v40 = vor.u32 %v657_v22, %v656_v30  ;;  %v661_v41 = vrot.slane %v656_v30, 4  ;;  %v699_v42 = vrot.slane %v697_v31, 7  ;;  %v515_v44 = vpop.f32.mrf.mxu0  ;;  %v524_v48 = vadd.f32 %v4131_v34, %v4586_v2 }
  0xf4   : > { %v680_v43 = vshrl.u32 %v3946_v33, 16  ;;  %v683_v45 = vshll.u32 %v3946_v33, 16  ;;  %v3949_v46 = vpack.c.bf16 %v569_v38, %v569_v38  ;;  %v567_v47 = vmax.f32 %v503_v39, 0.0 }
  0xf5   : > { %v660_v49 = vsel %vm4610_vm9, %v652_v17, %v659_v40  ;;  %v856_v50 = vsel %vm4602_vm8, %v661_v41, %v855_v37  ;;  %v702_v51 = vor.u32 %v700_v32, %v699_v42  ;;  %v703_v52 = vrot.slane %v699_v42, 4  ;;  %v4132_v53 = vpop.f32.mrf.mxu0  ;;  %v886_v42 = vld [vmem:[#allocation2 + $0x3c] sm:$0xf] }
  0xf6   : > { %v924_v54 = vld [vmem:[#allocation2 + $0xc] sm:$0x1]  ;;  %852 = vst.msk [vmem:[#allocation2 + $0x4] sm:$0xf] %vm845_vm2, %v660_v49  ;;  %857 = vst [vmem:[#allocation2 + $0x8] sm:$0x1] %v856_v50  ;;  %v3947_v58 = vpack.c.bf16 %v567_v47, %v567_v47  ;;  %v516_v0 = vadd.f32 %v4586_v2, %v515_v44  ;;  %v527_v37 = vadd.f32 %v4132_v53, %v4586_v2 }
  0xf7   : > { %v682_v55 = vrot.slane %v680_v43, 7  ;;  %v705_v56 = vshrl.u32 %v3949_v46, 16  ;;  %v708_v57 = vshll.u32 %v3949_v46, 16  ;;  %v925_v59 = vsel %vm4602_vm8, 0, %v924_v54  ;;  %v518_v1 = vpop.f32.mrf.mxu0  ;;  %v879_v50 = vld [vmem:[#allocation2 + $0x30] sm:$0xf] }
  0xf8   : > { %v873_v61 = vsel %vm4594_vm6, %v702_v51, %v872_v11  ;;  %v572_v63 = vmax.f32 %v524_v48, 0.0  ;;  %926 = vst [vmem:[#allocation2 + $0xc] sm:$0x1] %v925_v59  ;;  %v921_v4 = vld [vmem:[#allocation2] sm:$0x1]  ;;  %v688_v8 = vshrl.u32 %v3947_v58, 16  ;;  %v519_v43 = vadd.f32 %v4586_v2, %v518_v1 }
  0xf9   : > { %874 = vst [vmem:[#allocation2 + $0x24] sm:$0xf] %v873_v61  ;;  %v685_v5 = vor.u32 %v683_v45, %v682_v55  ;;  %v686_v6 = vrot.slane %v682_v55, 4  ;;  %v707_v7 = vrot.slane %v705_v56, 7  ;;  %v922_v9 = vsel %vm4602_vm8, 0, %v921_v4  ;;  %v4135_v16 = vpop.f32.mrf.mxu0 }
  0xfa   : > { %v691_v12 = vshll.u32 %v3947_v58, 16  ;;  %v3952_v13 = vpack.c.bf16 %v572_v63, %v572_v63  ;;  %v570_v15 = vmax.f32 %v516_v0, 0.0  ;;  %923 = vst [vmem:[#allocation2] sm:$0x1] %v922_v9  ;;  %v955_v17 = vld [vmem:[#allocation2 + $0x14] sm:$0x1] }
  0xfb   : > { %v866_v18 = vsel %vm4594_vm6, %v685_v5, %v865_v62  ;;  %v710_v20 = vor.u32 %v708_v57, %v707_v7  ;;  %v712_v21 = vrot.slane %v707_v7, 4  ;;  %v690_v22 = vrot.slane %v688_v8, 7  ;;  %v531_v28 = vpop.f32.mrf.mxu0 }
  0xfc   : > { %v956_v23 = vsel %vm4636_vm10, 0, %v955_v17  ;;  %867 = vst [vmem:[#allocation2 + $0x18] sm:$0xf] %v866_v18  ;;  %v731_v25 = vshrl.u32 %v3952_v13, 16  ;;  %v734_v26 = vshll.u32 %v3952_v13, 16  ;;  %v3950_v27 = vpack.c.bf16 %v570_v15, %v570_v15 }
  0xfd   : > { %957 = vst [vmem:[#allocation2 + $0x14] sm:$0x1] %v956_v23  ;;  %v711_v29 = vsel %vm4610_vm9, %v703_v52, %v710_v20  ;;  %v877_v30 = vsel %vm4602_vm8, %v712_v21, %v876_v10  ;;  %v693_v31 = vor.u32 %v691_v12, %v690_v22  ;;  %v695_v32 = vrot.slane %v690_v22, 4  ;;  %v952_v33 = vld [vmem:[#allocation2 + $0x8] sm:$0x1]  ;;  %v4136_v38 = vpop.f32.mrf.mxu0 }
  0xfe   : > { %875 = vst.msk [vmem:[#allocation2 + $0x28] sm:$0xf] %vm845_vm2, %v711_v29  ;;  %878 = vst [vmem:[#allocation2 + $0x2c] sm:$0x1] %v877_v30  ;;  %v4651_v34 = vrot.slane %v731_v25, 7  ;;  %v714_v35 = vshrl.u32 %v3950_v27, 16  ;;  %v540_v52 = vadd.f32 %v4135_v16, %v4586_v2  ;;  %v532_v53 = vadd.f32 %v4586_v2, %v531_v28 }
  0xff   : > { %v717_v36 = vshll.u32 %v3950_v27, 16  ;;  %v953_v39 = vsel %vm4636_vm10, 0, %v952_v33  ;;  %v694_v40 = vsel %vm4610_vm9, %v686_v6, %v693_v31  ;;  %v870_v41 = vsel %vm4602_vm8, %v695_v32, %v869_v24  ;;  %v534_v48 = vpop.f32.mrf.mxu0  ;;  %v890_v17 = vld [vmem:[#allocation2 + $0x44] sm:$0x1]  ;;  %v883_v29 = vld [vmem:[#allocation2 + $0x38] sm:$0x1] }
 0x100   : > { %954 = vst [vmem:[#allocation2 + $0x8] sm:$0x1] %v953_v39  ;;  %v930_v44 = vld [vmem:[#allocation2 + $0x24] sm:$0x1]  ;;  %868 = vst.msk [vmem:[#allocation2 + $0x1c] sm:$0xf] %vm845_vm2, %v694_v40  ;;  %v736_v11 = vor.u32 %v734_v26, %v4651_v34  ;;  %v543_v0 = vadd.f32 %v4136_v38, %v4586_v2  ;;  %v535_v20 = vadd.f32 %v4586_v2, %v534_v48 }
 0x101   : > { %871 = vst [vmem:[#allocation2 + $0x20] sm:$0x1] %v870_v41  ;;  %v737_v45 = vrot.slane %v4651_v34, 4  ;;  %v4664_v46 = vrot.slane %v714_v35, 7  ;;  %v573_v47 = vmax.f32 %v527_v37, 0.0  ;;  %v931_v49 = vsel %vm4602_vm8, 0, %v930_v44  ;;  %v4674_v58 = vpop.f32.mrf.mxu0 }
 0x102   : > { %v571_v51 = vmax.f32 %v519_v43, 0.0  ;;  %932 = vst [vmem:[#allocation2 + $0x24] sm:$0x1] %v931_v49  ;;  %v887_v54 = vsel %vm4594_vm6, %v736_v11, %v886_v42  ;;  %v576_v62 = vmax.f32 %v540_v52, 0.0  ;;  %v574_v63 = vmax.f32 %v532_v53, 0.0 }
 0x103   : > { %v719_v55 = vor.u32 %v717_v36, %v4664_v46  ;;  %v720_v56 = vrot.slane %v4664_v46, 4  ;;  %v3953_v57 = vpack.c.bf16 %v573_v47, %v573_v47  ;;  %v927_v59 = vld [vmem:[#allocation2 + $0x18] sm:$0x1]  ;;  %888 = vst [vmem:[#allocation2 + $0x3c] sm:$0xf] %v887_v54  ;;  %v547_v7 = vpop.f32.mrf.mxu0  ;;  %v577_v18 = vmax.f32 %v543_v0, 0.0 }
 0x104   : > { %v3951_v61 = vpack.c.bf16 %v571_v51, %v571_v51  ;;  %v928_v1 = vsel %vm4602_vm8, 0, %v927_v59  ;;  %v3956_v12 = vpack.c.bf16 %v576_v62, %v576_v62  ;;  %v3954_v13 = vpack.c.bf16 %v574_v63, %v574_v63  ;;  %v900_v39 = vld [vmem:[#allocation2 + $0x54] sm:$0xf]  ;;  %v904_v62 = vld [vmem:[#allocation2 + $0x5c] sm:$0x1] }
 0x105   : > { %v880_v4 = vsel %vm4594_vm6, %v719_v55, %v879_v50  ;;  %v739_v5 = vshrl.u32 %v3953_v57, 16  ;;  %v742_v6 = vshll.u32 %v3953_v57, 16  ;;  %929 = vst [vmem:[#allocation2 + $0x18] sm:$0x1] %v928_v1  ;;  %v961_v8 = vld [vmem:[#allocation2 + $0x2c] sm:$0x1]  ;;  %v4140_v31 = vpop.f32.mrf.mxu0  ;;  %v3957_v40 = vpack.c.bf16 %v577_v18, %v577_v18 }
 0x106   : > { %881 = vst [vmem:[#allocation2 + $0x30] sm:$0xf] %v880_v4  ;;  %v722_v9 = vshrl.u32 %v3951_v61, 16  ;;  %v725_v10 = vshll.u32 %v3951_v61, 16  ;;  %v962_v15 = vsel %vm4636_vm10, 0, %v961_v8  ;;  %v765_v23 = vshrl.u32 %v3956_v12, 16 }
 0x107   : > { %v741_v16 = vrot.slane %v739_v5, 7  ;;  %963 = vst [vmem:[#allocation2 + $0x2c] sm:$0x1] %v962_v15  ;;  %v768_v24 = vshll.u32 %v3956_v12, 16  ;;  %v748_v25 = vshrl.u32 %v3954_v13, 16  ;;  %v751_v30 = vshll.u32 %v3954_v13, 16  ;;  %v550_v50 = vpop.f32.mrf.mxu0 }
 0x108   : > { %v958_v21 = vld [vmem:[#allocation2 + $0x20] sm:$0x1]  ;;  %v724_v22 = vrot.slane %v722_v9, 7  ;;  %v767_v34 = vrot.slane %v765_v23, 7  ;;  %v575_v41 = vmax.f32 %v535_v20, 0.0  ;;  %v773_v49 = vshrl.u32 %v3957_v40, 16 }
 0x109   : > { %v959_v26 = vsel %vm4636_vm10, 0, %v958_v21  ;;  %v744_v27 = vor.u32 %v742_v6, %v741_v16  ;;  %v746_v28 = vrot.slane %v741_v16, 4  ;;  %v4686_v35 = vrot.slane %v748_v25, 7  ;;  %v897_v16 = vld [vmem:[#allocation2 + $0x50] sm:$0x1] }
 0x10a   : > { %960 = vst [vmem:[#allocation2 + $0x20] sm:$0x1] %v959_v26  ;;  %v727_v32 = vor.u32 %v725_v10, %v724_v22  ;;  %v729_v33 = vrot.slane %v724_v22, 4  ;;  %v936_v36 = vld [vmem:[#allocation2 + $0x3c] sm:$0x1]  ;;  %v770_v11 = vor.u32 %v768_v24, %v767_v34  ;;  %v771_v47 = vrot.slane %v767_v34, 4 }
 0x10b   : > { %v745_v37 = vsel %vm4610_vm9, %v737_v45, %v744_v27  ;;  %v891_v38 = vsel %vm4602_vm8, %v746_v28, %v890_v17  ;;  %v937_v42 = vsel %vm4602_vm8, 0, %v936_v36  ;;  %v893_v45 = vld [vmem:[#allocation2 + $0x48] sm:$0xf]  ;;  %v753_v48 = vor.u32 %v751_v30, %v4686_v35 }
 0x10c   : > { %889 = vst.msk [vmem:[#allocation2 + $0x40] sm:$0xf] %vm845_vm2, %v745_v37  ;;  %892 = vst [vmem:[#allocation2 + $0x44] sm:$0x1] %v891_v38  ;;  %v728_v43 = vsel %vm4610_vm9, %v720_v56, %v727_v32  ;;  %v884_v44 = vsel %vm4602_vm8, %v729_v33, %v883_v29  ;;  %v901_v52 = vsel %vm4594_vm6, %v770_v11, %v900_v39  ;;  %v776_v53 = vshll.u32 %v3957_v40, 16 }
 0x10d   : > { %938 = vst [vmem:[#allocation2 + $0x3c] sm:$0x1] %v937_v42  ;;  %v933_v46 = vld [vmem:[#allocation2 + $0x30] sm:$0x1]  ;;  %882 = vst.msk [vmem:[#allocation2 + $0x34] sm:$0xf] %vm845_vm2, %v728_v43  ;;  %v3955_v54 = vpack.c.bf16 %v575_v41, %v575_v41  ;;  %v894_v55 = vsel %vm4594_vm6, %v753_v48, %v893_v45  ;;  %v556_v57 = vadd.f32 %v4674_v58, %v4586_v2 }
 0x10e   : > { %885 = vst [vmem:[#allocation2 + $0x38] sm:$0x1] %v884_v44  ;;  %v934_v51 = vsel %vm4602_vm8, 0, %v933_v46  ;;  %902 = vst [vmem:[#allocation2 + $0x54] sm:$0xf] %v901_v52  ;;  %v775_v56 = vrot.slane %v773_v49, 7  ;;  %v548_v59 = vadd.f32 %v4586_v2, %v547_v7  ;;  %v559_v0 = vadd.f32 %v4140_v31, %v4586_v2 }
 0x10f   : > { %935 = vst [vmem:[#allocation2 + $0x30] sm:$0x1] %v934_v51  ;;  %v754_v61 = vrot.slane %v4686_v35, 4  ;;  %895 = vst [vmem:[#allocation2 + $0x48] sm:$0xf] %v894_v55  ;;  %v756_v63 = vshrl.u32 %v3955_v54, 16  ;;  %v551_v1 = vadd.f32 %v4586_v2, %v550_v50 }
 0x110   : > { %v778_v4 = vor.u32 %v776_v53, %v775_v56  ;;  %v780_v5 = vrot.slane %v775_v56, 4  ;;  %v580_v6 = vmax.f32 %v556_v57, 0.0  ;;  %v578_v8 = vmax.f32 %v548_v59, 0.0  ;;  %v914_v31 = vld [vmem:[#allocation2 + $0x6c] sm:$0xf] }
 0x111   : > { %v758_v9 = vrot.slane %v756_v63, 7  ;;  %v759_v10 = vshll.u32 %v3955_v54, 16  ;;  %v581_v12 = vmax.f32 %v559_v0, 0.0  ;;  %v579_v13 = vmax.f32 %v551_v1, 0.0  ;;  %v907_v39 = vld [vmem:[#allocation2 + $0x60] sm:$0xf] }
 0x112   : > { %v779_v7 = vsel %vm4610_vm9, %v771_v47, %v778_v4  ;;  %v905_v15 = vsel %vm4602_vm8, %v780_v5, %v904_v62  ;;  %v3960_v17 = vpack.c.bf16 %v580_v6, %v580_v6  ;;  %v3958_v18 = vpack.c.bf16 %v578_v8, %v578_v8  ;;  %v918_v11 = vld [vmem:[#allocation2 + $0x74] sm:$0x1]  ;;  %v911_v57 = vld [vmem:[#allocation2 + $0x68] sm:$0x1] }
 0x113   : > { %v967_v58 = vld [vmem:[#allocation2 + $0x44] sm:$0x1]  ;;  %903 = vst.msk [vmem:[#allocation2 + $0x58] sm:$0xf] %vm845_vm2, %v779_v7  ;;  %906 = vst [vmem:[#allocation2 + $0x5c] sm:$0x1] %v905_v15  ;;  %v761_v21 = vor.u32 %v759_v10, %v758_v9  ;;  %v3961_v23 = vpack.c.bf16 %v581_v12, %v581_v12  ;;  %v3959_v42 = vpack.c.bf16 %v579_v13, %v579_v13 }
 0x114   : > { %v968_v2 = vsel %vm4636_vm10, 0, %v967_v58  ;;  %v763_v22 = vrot.slane %v758_v9, 4  ;;  %v799_v25 = vshrl.u32 %v3960_v17, 16  ;;  %v782_v26 = vshrl.u32 %v3958_v18, 16 }
 0x115   : > { %v964_v20 = vld [vmem:[#allocation2 + $0x38] sm:$0x1]  ;;  %969 = vst [vmem:[#allocation2 + $0x44] sm:$0x1] %v968_v2  ;;  %v942_v27 = vld [vmem:[#allocation2 + $0x54] sm:$0x1]  ;;  %v762_v28 = vsel %vm4610_vm9, %v754_v61, %v761_v21 }
 0x116   : > { %v965_v24 = vsel %vm4636_vm10, 0, %v964_v20  ;;  %v898_v29 = vsel %vm4602_vm8, %v763_v22, %v897_v16  ;;  %v802_v30 = vshll.u32 %v3960_v17, 16  ;;  %v807_v32 = vshrl.u32 %v3961_v23, 16  ;;  %v939_v34 = vld [vmem:[#allocation2 + $0x48] sm:$0x1] }
 0x117   : > { %966 = vst [vmem:[#allocation2 + $0x38] sm:$0x1] %v965_v24  ;;  %v943_v33 = vsel %vm4602_vm8, 0, %v942_v27  ;;  %896 = vst.msk [vmem:[#allocation2 + $0x4c] sm:$0xf] %vm845_vm2, %v762_v28  ;;  %v801_v35 = vrot.slane %v799_v25, 7 }
 0x118   : > { %899 = vst [vmem:[#allocation2 + $0x50] sm:$0x1] %v898_v29  ;;  %v784_v36 = vrot.slane %v782_v26, 7  ;;  %v785_v37 = vshll.u32 %v3958_v18, 16  ;;  %944 = vst [vmem:[#allocation2 + $0x54] sm:$0x1] %v943_v33 }
 0x119   : > { %v940_v38 = vsel %vm4602_vm8, 0, %v939_v34  ;;  %v809_v40 = vrot.slane %v807_v32, 7  ;;  %v810_v41 = vshll.u32 %v3961_v23, 16  ;;  %v804_v43 = vor.u32 %v802_v30, %v801_v35 }
 0x11a   : > { %941 = vst [vmem:[#allocation2 + $0x48] sm:$0x1] %v940_v38  ;;  %v787_v44 = vor.u32 %v785_v37, %v784_v36  ;;  %v805_v45 = vrot.slane %v801_v35, 4  ;;  %v790_v48 = vshrl.u32 %v3959_v42, 16  ;;  %v973_v49 = vld [vmem:[#allocation2 + $0x5c] sm:$0x1] }
 0x11b   : > { %v812_v46 = vor.u32 %v810_v41, %v809_v40  ;;  %v814_v47 = vrot.slane %v809_v40, 4  ;;  %v915_v50 = vsel %vm4594_vm6, %v804_v43, %v914_v31  ;;  %v793_v52 = vshll.u32 %v3959_v42, 16 }
 0x11c   : > { %v908_v51 = vsel %vm4594_vm6, %v787_v44, %v907_v39  ;;  %v974_v53 = vsel %vm4636_vm10, 0, %v973_v49  ;;  %916 = vst [vmem:[#allocation2 + $0x6c] sm:$0xf] %v915_v50  ;;  %v792_v56 = vrot.slane %v790_v48, 7  ;;  %v788_v59 = vrot.slane %v784_v36, 4 }
 0x11d   : > { %909 = vst [vmem:[#allocation2 + $0x60] sm:$0xf] %v908_v51  ;;  %v813_v54 = vsel %vm4610_vm9, %v805_v45, %v812_v46  ;;  %v919_v55 = vsel %vm4602_vm8, %v814_v47, %v918_v11  ;;  %975 = vst [vmem:[#allocation2 + $0x5c] sm:$0x1] %v974_v53 }
 0x11e   : > { %917 = vst.msk [vmem:[#allocation2 + $0x70] sm:$0xf] %vm845_vm2, %v813_v54  ;;  %920 = vst [vmem:[#allocation2 + $0x74] sm:$0x1] %v919_v55  ;;  %v795_v61 = vor.u32 %v793_v52, %v792_v56  ;;  %v797_v62 = vrot.slane %v792_v56, 4 }
 0x11f   : > { %v970_v60 = vld [vmem:[#allocation2 + $0x50] sm:$0x1] }
 0x120   : > { %v971_v63 = vsel %vm4636_vm10, 0, %v970_v60  ;;  %v796_v0 = vsel %vm4610_vm9, %v788_v59, %v795_v61  ;;  %v912_v1 = vsel %vm4602_vm8, %v797_v62, %v911_v57 }
 0x121   : > { %972 = vst [vmem:[#allocation2 + $0x50] sm:$0x1] %v971_v63  ;;  %910 = vst.msk [vmem:[#allocation2 + $0x64] sm:$0xf] %vm845_vm2, %v796_v0 }
 0x122   : > { %913 = vst [vmem:[#allocation2 + $0x68] sm:$0x1] %v912_v1 }
 0x123   : > { %v948_v4 = vld [vmem:[#allocation2 + $0x6c] sm:$0x1] }
 0x124   : > { %v945_v5 = vld [vmem:[#allocation2 + $0x60] sm:$0x1]  ;;  %v949_v6 = vsel %vm4602_vm8, 0, %v948_v4 }
 0x125   : > { %v946_v8 = vsel %vm4602_vm8, 0, %v945_v5  ;;  %v979_v9 = vld [vmem:[#allocation2 + $0x74] sm:$0x1]  ;;  %950 = vst [vmem:[#allocation2 + $0x6c] sm:$0x1] %v949_v6 }
 0x126   : > { %947 = vst [vmem:[#allocation2 + $0x60] sm:$0x1] %v946_v8  ;;  %v980_v19 = vsel %vm4636_vm10, 0, %v979_v9 }
 0x127   : > { %981 = vst [vmem:[#allocation2 + $0x74] sm:$0x1] %v980_v19  ;;  %985 = sbr.rel (%p3727_p7) target bundleno = 303 (0x12f), region = 48 }
 0x129   : > { %v976_v10 = vld [vmem:[#allocation2 + $0x68] sm:$0x1] }
 0x12a   : > { %v977_v12 = vsel %vm4636_vm10, 0, %v976_v10 }
 0x12b   : > { %978 = vst [vmem:[#allocation2 + $0x68] sm:$0x1] %v977_v12 }
 0x12c   : > { %v4429_v13 = vmov 0  }
 0x12d   : > { %986 = vst.msk [vmem:[#allocation2] sm:$0xf] %vm845_vm2, %v4429_v13  ;;  %987 = vst.msk [vmem:[#allocation2 + $0x4] sm:$0xf] %vm845_vm2, %v4429_v13 }
 0x12e   : > { %989 = vst.msk [vmem:[#allocation2 + $0x8] sm:$0x1] %vm853_vm5, %v4429_v13 }
 0x12f PF: > { %p3728_p8 = scmp.ne.s32.totalorder %s4411_s21, 1 }
 0x131   : > { %993 = sbr.rel (%p3728_p8) target bundleno = 313 (0x139), region = 52 }
 0x136   : > { %v4430_v14 = vmov 0  }
 0x137   : > { %995 = vst.msk [vmem:[#allocation2 + $0x6c] sm:$0xf] %vm845_vm2, %v4430_v14  ;;  %996 = vst.msk [vmem:[#allocation2 + $0x70] sm:$0xf] %vm845_vm2, %v4430_v14 }
 0x138   : > { %998 = vst.msk [vmem:[#allocation2 + $0x74] sm:$0x1] %vm853_vm5, %v4430_v14 }
 0x139 PF: > { %v4356_v3 = vld [vmem:[%s5739_s2 + $0x8] sm:$0x3f]   ;;  %vm1277_vm11 = vcmask 1045504   ;;  %v4768_v58 = vld [vmem:[#allocation2] sm:$0xf]  ;;  %vm1252_vm14 = vcmask 97280  }
 0x13a   : > { %v4770_v7 = vld [vmem:[#allocation2 + $0x4] sm:$0xf]  ;;  %4304 = vmatprep.subr.msk.bf16.mxu1 %vm1277_vm11, %v4356_v3  ;;  %v1279_v15 = vsel %vm1277_vm11, %v4356_v3, 0  ;;  %v4774_v16 = vld [vmem:[#allocation2 + $0x8] sm:$0x1]  ;;  %v1032_v17 = vshrl.u32 %v4768_v58, 16 }
 0x13b   : > { %vm1028_vm12 = vsmask.f32 3328  ;;  %4142 = vmatpush3.bf16.msra.mxu1 %v1279_v15  ;;  %vm1029_vm13 = vsmask.f32 7440  ;;  %v1035_v18 = vshll.u32 %v4768_v58, 16  ;;  %v1041_v2 = vshll.u32 %v4770_v7, 16 }
 0x13c   : > { %v1045_v20 = vshrl.u32 %v4770_v7, 16  ;;  %v1034_v21 = vrot.slane %v1032_v17, 4  ;;  %v1051_v22 = vshll.u32 %v4774_v16, 16  ;;  %v4357_v26 = vld [vmem:[%s5739_s2] sm:$0x3f]   ;;  %vm4797_vm15 = vmor %vm1028_vm12, %vm1029_vm13  ;;  %vm1574_vm0 = vcmask 1042432  }
 0x13d   : > { %v1037_v23 = vrot.slane %v1035_v18, 5  ;;  %v1043_v24 = vrot.slane %v1041_v2, 5  ;;  %v4784_v28 = vld [vmem:[#allocation2 + $0xc] sm:$0xf]  ;;  %v4786_v29 = vld [vmem:[#allocation2 + $0x10] sm:$0xf]  ;;  %4305 = vmatprep.subr.msk.bf16.mxu1 %vm1277_vm11, %v4357_v26 }
 0x13e   : > { %v1047_v25 = vrot.slane %v1045_v20, 4  ;;  %v1053_v27 = vrot.slane %v1051_v22, 5  ;;  %v4789_v32 = vld [vmem:[#allocation2 + $0x14] sm:$0x1]  ;;  %v1056_v33 = vshrl.u32 %v4784_v28, 16  ;;  %v1059_v34 = vshll.u32 %v4784_v28, 16 }
 0x13f   : > { %v1038_v30 = vor.u32 %v1037_v23, %v1034_v21  ;;  %v4793_v35 = vld [vmem:[#allocation2 + $0x18] sm:$0xf]  ;;  %v1065_v37 = vshll.u32 %v4786_v29, 16  ;;  %v1069_v38 = vshrl.u32 %v4786_v29, 16  ;;  %v1075_v39 = vshll.u32 %v4789_v32, 16 }
 0x140   : > { %v1048_v31 = vor.u32 %v1047_v25, %v1043_v24  ;;  %v1448_v40 = vsel %vm1277_vm11, %v4357_v26, 0  ;;  %v1058_v43 = vrot.slane %v1056_v33, 4  ;;  %v1061_v44 = vrot.slane %v1059_v34, 5  ;;  %v4805_v11 = vld [vmem:[#allocation2 + $0x1c] sm:$0xf] }
 0x141   : > { %v1039_v41 = vrot.slane %v1038_v30, 4  ;;  %v1067_v45 = vrot.slane %v1065_v37, 5  ;;  %v1071_v46 = vrot.slane %v1069_v38, 4  ;;  %v1077_v47 = vrot.slane %v1075_v39, 5  ;;  %v4807_v48 = vld [vmem:[#allocation2 + $0x20] sm:$0x1] }
 0x142   : > { %v1049_v42 = vrot.slane %v1048_v31, 4  ;;  %v1080_v49 = vshrl.u32 %v4793_v35, 16  ;;  %v1062_v52 = vor.u32 %v1061_v44, %v1058_v43  ;;  %v1083_v53 = vshll.u32 %v4793_v35, 16  ;;  %v4815_v54 = vld [vmem:[#allocation2 + $0x24] sm:$0xf] }
 0x143   : > { %v1044_v50 = vsel %vm4797_vm15, %v1039_v41, %v1043_v24  ;;  %v1072_v56 = vor.u32 %v1071_v46, %v1067_v45  ;;  %v1089_v60 = vshll.u32 %v4805_v11, 16  ;;  %v1093_v62 = vshrl.u32 %v4805_v11, 16  ;;  %v4820_v0 = vld [vmem:[#allocation2 + $0x28] sm:$0xf]  ;;  %v4827_v12 = vld [vmem:[#allocation2 + $0x2c] sm:$0x1] }
 0x144   : > { %v1054_v51 = vsel %vm4797_vm15, %v1049_v42, %v1053_v27  ;;  %v1082_v57 = vrot.slane %v1080_v49, 4  ;;  %v1063_v59 = vrot.slane %v1062_v52, 4  ;;  %v1085_v61 = vrot.slane %v1083_v53, 5  ;;  %v4829_v13 = vld [vmem:[#allocation2 + $0x30] sm:$0xf] }
 0x145   : > { %v3731_v55 = vcombine.low %v1044_v50, %v1054_v51  ;;  %v1099_v63 = vshll.u32 %v4807_v48, 16  ;;  %v1073_v1 = vrot.slane %v1072_v56, 4  ;;  %v1091_v4 = vrot.slane %v1089_v60, 5  ;;  %v4835_v22 = vld [vmem:[#allocation2 + $0x34] sm:$0xf] }
 0x146   : > { %v1104_v5 = vshrl.u32 %v4815_v54, 16  ;;  %v1107_v6 = vshll.u32 %v4815_v54, 16  ;;  %v1068_v8 = vsel %vm4797_vm15, %v1063_v59, %v1067_v45  ;;  %v1086_v9 = vor.u32 %v1085_v61, %v1082_v57  ;;  %v4838_v26 = vld [vmem:[#allocation2 + $0x38] sm:$0x1]  ;;  %v4845_v37 = vld [vmem:[#allocation2 + $0x3c] sm:$0xf] }
 0x147   : > { %4143 = vmatprep.mubr.msk.bf16.mxu1 %vm1252_vm14, %v3731_v55  ;;  %v1095_v19 = vrot.slane %v1093_v62, 4  ;;  %v1101_v10 = vrot.slane %v1099_v63, 5  ;;  %v1078_v14 = vsel %vm4797_vm15, %v1073_v1, %v1077_v47  ;;  %v1113_v17 = vshll.u32 %v4820_v0, 16  ;;  %v4848_v43 = vld [vmem:[#allocation2 + $0x40] sm:$0xf] }
 0x148   : > { %v1106_v3 = vrot.slane %v1104_v5, 4  ;;  %v1109_v15 = vrot.slane %v1107_v6, 5  ;;  %v3732_v18 = vcombine.low %v1068_v8, %v1078_v14  ;;  %v1087_v2 = vrot.slane %v1086_v9, 4  ;;  %v4856_v52 = vld [vmem:[#allocation2 + $0x44] sm:$0x1] }
 0x149   : > { %v1096_v20 = vor.u32 %v1095_v19, %v1091_v4  ;;  %v1117_v21 = vshrl.u32 %v4820_v0, 16  ;;  %v1115_v24 = vrot.slane %v1113_v17, 5  ;;  %v1123_v25 = vshll.u32 %v4827_v12, 16  ;;  %v4858_v53 = vld [vmem:[#allocation2 + $0x48] sm:$0xf] }
 0x14a   : > { %v1110_v23 = vor.u32 %v1109_v15, %v1106_v3  ;;  %v1128_v27 = vshrl.u32 %v4829_v13, 16  ;;  %4144 = vmatmul.mubr.msk.bf16.vlgmr.msra.gmra.mxu1 %vm1252_vm14, %v3732_v18  ;;  %v1092_v30 = vsel %vm4797_vm15, %v1087_v2, %v1091_v4  ;;  %v1131_v34 = vshll.u32 %v4829_v13, 16  ;;  %v4863_v55 = vld [vmem:[%s5739_s2 + $0x10] sm:$0x3f]   ;;  %v4866_v61 = vld [vmem:[#allocation2 + $0x4c] sm:$0xf] }
 0x14b   : > { %v1097_v31 = vrot.slane %v1096_v20, 4  ;;  %v1119_v33 = vrot.slane %v1117_v21, 4  ;;  %4160 = vmatpush3.bf16.msra.mxu1 %v1448_v40  ;;  %v1125_v39 = vrot.slane %v1123_v25, 5  ;;  %v1137_v42 = vshll.u32 %v4835_v22, 16  ;;  %4306 = vmatprep.subr.msk.bf16.mxu0 %vm1277_vm11, %v4863_v55  ;;  %v4879_v19 = vld [vmem:[%s5739_s2 + $0x18] sm:$0x3f]  }
 0x14c   : > { %v1111_v38 = vrot.slane %v1110_v23, 4  ;;  %v1130_v41 = vrot.slane %v1128_v27, 4  ;;  %v1133_v46 = vrot.slane %v1131_v34, 5  ;;  %v1141_v47 = vshrl.u32 %v4835_v22, 16  ;;  %4307 = vmatprep.subr.msk.bf16.mxu1 %vm1277_vm11, %v4879_v19 }
 0x14d   : > { %v1102_v44 = vsel %vm4797_vm15, %v1097_v31, %v1101_v10  ;;  %v1120_v45 = vor.u32 %v1119_v33, %v1115_v24  ;;  %v1139_v51 = vrot.slane %v1137_v42, 5  ;;  %v1147_v40 = vshll.u32 %v4838_v26, 16 }
 0x14e   : > { %v3733_v49 = vcombine.low %v1092_v30, %v1102_v44  ;;  %v1116_v50 = vsel %vm4797_vm15, %v1111_v38, %v1115_v24  ;;  %v1134_v57 = vor.u32 %v1133_v46, %v1130_v41  ;;  %v1143_v60 = vrot.slane %v1141_v47, 4  ;;  %v4888_v24 = vld [vmem:[#allocation2 + $0x50] sm:$0x1]  ;;  %v4892_v30 = vld [vmem:[#allocation2 + $0x54] sm:$0xf] }
 0x14f   : > { %v1121_v56 = vrot.slane %v1120_v45, 4  ;;  %v1152_v59 = vshrl.u32 %v4845_v37, 16  ;;  %v1149_v62 = vrot.slane %v1147_v40, 5  ;;  %v1155_v63 = vshll.u32 %v4845_v37, 16 }
 0x150   : > { %4147 = vmatprep.mubr.msk.bf16.mxu1 %vm1252_vm14, %v3733_v49  ;;  %v1161_v1 = vshll.u32 %v4848_v43, 16  ;;  %v1165_v4 = vshrl.u32 %v4848_v43, 16  ;;  %v1135_v6 = vrot.slane %v1134_v57, 4  ;;  %v1144_v8 = vor.u32 %v1143_v60, %v1139_v51  ;;  %v4898_v49 = vld [vmem:[#allocation2 + $0x58] sm:$0xf] }
 0x151   : > { %v1126_v5 = vsel %vm4797_vm15, %v1121_v56, %v1125_v39  ;;  %v1154_v9 = vrot.slane %v1152_v59, 4  ;;  %vm1575_vm1 = vcmask 1046532   ;;  %v1157_v14 = vrot.slane %v1155_v63, 5  ;;  %v4906_v57 = vld [vmem:[#allocation2 + $0x5c] sm:$0x1] }
 0x152   : > { %v3734_v10 = vcombine.low %v1116_v50, %v1126_v5  ;;  %v1163_v3 = vrot.slane %v1161_v1, 5  ;;  %v1167_v15 = vrot.slane %v1165_v4, 4  ;;  %v1140_v17 = vsel %vm4797_vm15, %v1135_v6, %v1139_v51  ;;  %v1547_v59 = vld [vmem:[#allocation2] sm:$0xe]  ;;  %vm4922_vm2 = vmor %vm1574_vm0, %vm1575_vm1 }
 0x153   : > { %v1145_v18 = vrot.slane %v1144_v8, 4  ;;  %v1171_v2 = vshll.u32 %v4856_v52, 16  ;;  %v1176_v20 = vshrl.u32 %v4858_v53, 16  ;;  %v1158_v21 = vor.u32 %v1157_v14, %v1154_v9  ;;  %v4362_v5 = vld [vmem:[%s5739_s2 + $0x20] sm:$0x3f]  }
 0x154   : > { %4148 = vmatmul.mubr.msk.bf16.gmra.mxu1 %vm1252_vm14, %v3734_v10  ;;  %v1168_v23 = vor.u32 %v1167_v15, %v1163_v3  ;;  %v1179_v25 = vshll.u32 %v4858_v53, 16  ;;  %v1185_v27 = vshll.u32 %v4866_v61, 16  ;;  %v1189_v38 = vshrl.u32 %v4866_v61, 16 }
 0x155   : > { %v1150_v31 = vsel %vm4797_vm15, %v1145_v18, %v1149_v62  ;;  %v1173_v33 = vrot.slane %v1171_v2, 5  ;;  %v1178_v34 = vrot.slane %v1176_v20, 4  ;;  %v1159_v41 = vrot.slane %v1158_v21, 4  ;;  %v1548_v18 = vld [vmem:[#allocation2 + $0xc] sm:$0xe] }
 0x156   : > { %v3735_v39 = vcombine.low %v1140_v17, %v1150_v31  ;;  %v1169_v42 = vrot.slane %v1168_v23, 4  ;;  %v1181_v44 = vrot.slane %v1179_v25, 5  ;;  %v1187_v45 = vrot.slane %v1185_v27, 5 }
 0x157   : > { %v1191_v46 = vrot.slane %v1189_v38, 4  ;;  %v1195_v47 = vshll.u32 %v4888_v24, 16  ;;  %v1200_v50 = vshrl.u32 %v4892_v30, 16  ;;  %v1164_v51 = vsel %vm4797_vm15, %v1159_v41, %v1163_v3 }
 0x158   : > { %4151 = vmatprep.mubr.msk.bf16.mxu1 %vm1252_vm14, %v3735_v39  ;;  %v1174_v40 = vsel %vm4797_vm15, %v1169_v42, %v1173_v33  ;;  %v1182_v56 = vor.u32 %v1181_v44, %v1178_v34  ;;  %v1203_v60 = vshll.u32 %v4892_v30, 16  ;;  %v1209_v9 = vshll.u32 %v4898_v49, 16  ;;  %v1549_v34 = vld [vmem:[#allocation2 + $0x18] sm:$0xe] }
 0x159   : > { %v3736_v62 = vcombine.low %v1164_v51, %v1174_v40  ;;  %v1192_v63 = vor.u32 %v1191_v46, %v1187_v45  ;;  %v1197_v1 = vrot.slane %v1195_v47, 5  ;;  %v1202_v4 = vrot.slane %v1200_v50, 4 }
 0x15a   : > { %v1183_v6 = vrot.slane %v1182_v56, 4  ;;  %v1205_v8 = vrot.slane %v1203_v60, 5  ;;  %v1213_v10 = vshrl.u32 %v4898_v49, 16  ;;  %v1219_v3 = vshll.u32 %v4906_v57, 16  ;;  %v1550_v56 = vld [vmem:[#allocation2 + $0x24] sm:$0xe] }
 0x15b   : > { %v1193_v14 = vrot.slane %v1192_v63, 4  ;;  %v1687_v15 = vsel %vm1277_vm11, %v4863_v55, 0  ;;  %v3767_v17 = vrot.slane %v1547_v59, 9  ;;  %v1211_v21 = vrot.slane %v1209_v9, 5 }
 0x15c   : > { %4152 = vmatmul.mubr.msk.bf16.gmra.mxu1 %vm1252_vm14, %v3736_v62  ;;  %v1188_v2 = vsel %vm4797_vm15, %v1183_v6, %v1187_v45  ;;  %v1206_v20 = vor.u32 %v1205_v8, %v1202_v4  ;;  %v1215_v23 = vrot.slane %v1213_v10, 4  ;;  %4178 = vmatpush3.bf16.msra.mxu0 %v1687_v15  ;;  %v1221_v27 = vrot.slane %v1219_v3, 5 }
 0x15d   : > { %v1198_v55 = vsel %vm4797_vm15, %v1193_v14, %v1197_v1  ;;  %v1579_v31 = vrot.slane %v4770_v7, 5  ;;  %v1582_v33 = vrot.slane %v4774_v16, 5  ;;  %4308 = vmatprep.subr.msk.bf16.mxu0 %vm1277_vm11, %v4362_v5  ;;  %v3768_v42 = vrot.slane %v1548_v18, 9  ;;  %v4960_v18 = vld [vmem:[%s5739_s2 + $0x30] sm:$0x3f]  }
 0x15e   : > { %v3737_v38 = vcombine.low %v1188_v2, %v1198_v55  ;;  %v1207_v39 = vrot.slane %v1206_v20, 4  ;;  %v1216_v41 = vor.u32 %v1215_v23, %v1211_v21  ;;  %v1586_v46 = vrot.slane %v4786_v29, 5  ;;  %v1553_v23 = vld [vmem:[#allocation2 + $0x48] sm:$0xe] }
 0x15f   : > { %v1580_v44 = vsel %vm4922_vm2, %v3767_v17, %v1579_v31  ;;  %v1581_v45 = vrot.slane %v1579_v31, 4  ;;  %v1589_v47 = vrot.slane %v4789_v32, 5  ;;  %v3748_v51 = vcombine.low %v4768_v58, %v4770_v7  ;;  %v1551_v7 = vld [vmem:[#allocation2 + $0x30] sm:$0xe]  ;;  %v1552_v17 = vld [vmem:[#allocation2 + $0x3c] sm:$0xe] }
 0x160   : > { %4155 = vmatprep.mubr.msk.bf16.mxu1 %vm1252_vm14, %v3737_v38  ;;  %v1212_v16 = vsel %vm4797_vm15, %v1207_v39, %v1211_v21  ;;  %v1217_v50 = vrot.slane %v1216_v41, 4  ;;  %v3749_v40 = vcombine.low %v4784_v28, %v4786_v29  ;;  %v1587_v59 = vsel %vm4922_vm2, %v3768_v42, %v1586_v46  ;;  %v1554_v42 = vld [vmem:[#allocation2 + $0x54] sm:$0xe] }
 0x161   : > { %v1583_v60 = vsel %vm4922_vm2, %v1581_v45, %v1582_v33  ;;  %v1588_v32 = vrot.slane %v1586_v46, 4  ;;  %v2280_v62 = vsel %vm1277_vm11, %v4362_v5, 0  ;;  %v3769_v4 = vrot.slane %v1549_v34, 9 }
 0x162   : > { %v1222_v63 = vsel %vm4797_vm15, %v1217_v50, %v1221_v27  ;;  %v3775_v1 = vcombine.low %v1580_v44, %v1583_v60  ;;  %v1593_v58 = vrot.slane %v4805_v11, 5  ;;  %v1596_v9 = vrot.slane %v4807_v48, 5 }
 0x163   : > { %v3738_v6 = vcombine.low %v1212_v16, %v1222_v63  ;;  %v1590_v8 = vsel %vm4922_vm2, %v1588_v32, %v1589_v47  ;;  %v3770_v10 = vrot.slane %v1550_v56, 9  ;;  %v1600_v15 = vrot.slane %v4820_v0, 5  ;;  %v4996_v56 = vld [vmem:[#allocation2 + $0x10] sm:$0xf]  ;;  %v5001_v63 = vld [vmem:[#allocation2 + $0x14] sm:$0x1] }
 0x164   : > { %4179 = vmatprep.mubr.msk.bf16.mxu0 %vm1252_vm14, %v3775_v1  ;;  %v3776_v14 = vcombine.low %v1587_v59, %v1590_v8  ;;  %v1594_v5 = vsel %vm4922_vm2, %v3769_v4, %v1593_v58  ;;  %v1595_v3 = vrot.slane %v1593_v58, 4  ;;  %v1892_v48 = vsel %vm1277_vm11, %v4879_v19, 0  ;;  %v4370_v1 = vld [vmem:[%s5739_s2 + $0x28] sm:$0x3f]  }
 0x165   : > { %4156 = vmatmul.mubr.msk.bf16.gmra.mxu1 %vm1252_vm14, %v3738_v6  ;;  %v1603_v2 = vrot.slane %v4827_v12, 5  ;;  %v3750_v20 = vcombine.low %v4793_v35, %v4805_v11  ;;  %v3771_v21 = vrot.slane %v1551_v7, 9  ;;  %v1601_v27 = vsel %vm4922_vm2, %v3770_v10, %v1600_v15 }
 0x166   : > { %4180 = vmatmul.mubr.msk.bf16.vlgmr.msra.gmra.mxu0 %vm1252_vm14, %v3776_v14  ;;  %4161 = vmatprep.mubr.msk.bf16.mxu1 %vm1252_vm14, %v3748_v51  ;;  %v1597_v55 = vsel %vm4922_vm2, %v1595_v3, %v1596_v9  ;;  %v1602_v31 = vrot.slane %v1600_v15, 4  ;;  %v1607_v19 = vrot.slane %v4835_v22, 5  ;;  %v1610_v33 = vrot.slane %v4838_v26, 5  ;;  %v2007_v51 = vld [vmem:[#allocation2 + $0xc] sm:$0xf] }
 0x167   : > { %4214 = vmatpush3.bf16.msra.mxu0 %v2280_v62  ;;  %v3777_v12 = vcombine.low %v1594_v5, %v1597_v55  ;;  %v3772_v35 = vrot.slane %v1552_v17, 9  ;;  %v1614_v11 = vrot.slane %v4848_v43, 5  ;;  %v1617_v41 = vrot.slane %v4856_v52, 5  ;;  %v2010_v14 = vld [vmem:[#allocation2 + $0x18] sm:$0xf] }
 0x168   : > { %v1604_v34 = vsel %vm4922_vm2, %v1602_v31, %v1603_v2  ;;  %v1608_v38 = vsel %vm4922_vm2, %v3771_v21, %v1607_v19  ;;  %v1609_v39 = vrot.slane %v1607_v19, 4  ;;  %4310 = vmatprep.subr.msk.bf16.mxu0 %vm1277_vm11, %v4960_v18  ;;  %v3751_v26 = vcombine.low %v4815_v54, %v4820_v0 }
 0x169   : > { %4183 = vmatprep.mubr.msk.bf16.mxu0 %vm1252_vm14, %v3777_v12  ;;  %v3778_v44 = vcombine.low %v1601_v27, %v1604_v34  ;;  %v4989_v45 = vsel %vm4922_vm2, %v3772_v35, %v1614_v11  ;;  %v1616_v46 = vrot.slane %v1614_v11, 4  ;;  %v3752_v52 = vcombine.low %v4829_v13, %v4835_v22 }
 0x16a   : > { %v1611_v47 = vsel %vm4922_vm2, %v1609_v39, %v1610_v33  ;;  %v3773_v16 = vrot.slane %v1553_v23, 9  ;;  %v1621_v50 = vrot.slane %v4866_v61, 5  ;;  %v1624_v32 = vrot.slane %v4888_v24, 5  ;;  %v5039_v23 = vld [vmem:[#allocation2 + $0x20] sm:$0x1] }
 0x16b   : > { %v3779_v60 = vcombine.low %v1608_v38, %v1611_v47  ;;  %v1618_v59 = vsel %vm4922_vm2, %v1616_v46, %v1617_v41  ;;  %v3774_v62 = vrot.slane %v1554_v42, 9  ;;  %v3753_v58 = vcombine.low %v4845_v37, %v4848_v43  ;;  %v2013_v33 = vld [vmem:[#allocation2 + $0x24] sm:$0xf]  ;;  %v5045_v39 = vld [vmem:[#allocation2 + $0x28] sm:$0xf] }
 0x16c   : > { %v3780_v4 = vcombine.low %v4989_v45, %v1618_v59  ;;  %v1623_v7 = vrot.slane %v1621_v50, 4  ;;  %v1628_v6 = vrot.slane %v4898_v49, 5  ;;  %v1622_v24 = vsel %vm4922_vm2, %v3773_v16, %v1621_v50 }
 0x16d   : > { %4162 = vmatmul.mubr.msk.bf16.vlgmr.msra.gmra.mxu1 %vm1252_vm14, %v3749_v40  ;;  %v1631_v8 = vrot.slane %v4906_v57, 5  ;;  %v3754_v9 = vcombine.low %v4858_v53, %v4866_v61  ;;  %v2035_v10 = vshrl.u32 %v2007_v51, 16  ;;  %v3755_v28 = vcombine.low %v4892_v30, %v4898_v49  ;;  %v4369_v61 = vld [vmem:[#allocation2 + $0xc] sm:$0xff]  }
 0x16e   : > { %4196 = vmatpush3.bf16.msra.mxu1 %v1892_v48  ;;  %4184 = vmatmul.mubr.msk.bf16.gmra.mxu0 %vm1252_vm14, %v3778_v44  ;;  %v1625_v5 = vsel %vm4922_vm2, %v1623_v7, %v1624_v32  ;;  %v1630_v3 = vrot.slane %v1628_v6, 4  ;;  %v2038_v29 = vshll.u32 %v2007_v51, 16  ;;  %v5028_v57 = vsel %vm4922_vm2, %v3774_v62, %v1628_v6  ;;  %v5032_v48 = vld [vmem:[#allocation2 + $0x1c] sm:$0xf]  ;;  %v5054_v51 = vld [vmem:[#allocation2 + $0x2c] sm:$0x1] }
 0x16f   : > { %4165 = vmatprep.mubr.msk.bf16.mxu1 %vm1252_vm14, %v3750_v20  ;;  %4187 = vmatprep.mubr.msk.bf16.mxu0 %vm1252_vm14, %v3779_v60  ;;  %v2037_v40 = vrot.slane %v2035_v10, 4  ;;  %v2044_v15 = vshll.u32 %v4996_v56, 16  ;;  %v2048_v17 = vshrl.u32 %v4996_v56, 16  ;;  %v2054_v20 = vshll.u32 %v5001_v63, 16  ;;  %v2016_v7 = vld [vmem:[#allocation2 + $0x30] sm:$0xf] }
 0x170   : > { %v5036_v2 = vsel %vm4922_vm2, %v1630_v3, %v1631_v8  ;;  %v2040_v21 = vrot.slane %v2038_v29, 5  ;;  %v2059_v55 = vshrl.u32 %v2010_v14, 16  ;;  %4309 = vmatprep.subr.msk.bf16.mxu1 %vm1277_vm11, %v4370_v1  ;;  %v3781_v27 = vcombine.low %v1622_v24, %v1625_v5  ;;  %v5064_v6 = vld [vmem:[#allocation2 + $0x34] sm:$0xf] }
 0x171   : > { %v2046_v31 = vrot.slane %v2044_v15, 5  ;;  %v2050_v19 = vrot.slane %v2048_v17, 4  ;;  %v2062_v12 = vshll.u32 %v2010_v14, 16  ;;  %v3782_v35 = vcombine.low %v5028_v57, %v5036_v2  ;;  %v5079_v14 = vld [vmem:[#allocation2 + $0x38] sm:$0x1] }
 0x172   : > { %v2041_v11 = vor.u32 %v2040_v21, %v2037_v40  ;;  %v2061_v34 = vrot.slane %v2059_v55, 4  ;;  %v2068_v38 = vshll.u32 %v5032_v48, 16  ;;  %v2056_v42 = vrot.slane %v2054_v20, 5  ;;  %v2019_v40 = vld [vmem:[#allocation2 + $0x3c] sm:$0xf] }
 0x173   : > { %v2051_v41 = vor.u32 %v2050_v19, %v2046_v31  ;;  %v2064_v44 = vrot.slane %v2062_v12, 5  ;;  %v2072_v45 = vshrl.u32 %v5032_v48, 16  ;;  %v2078_v16 = vshll.u32 %v5039_v23, 16  ;;  %v5087_v19 = vld [vmem:[#allocation2 + $0x40] sm:$0xf] }
 0x174   : > { %v2042_v46 = vrot.slane %v2041_v11, 4  ;;  %v5048_v47 = vrot.slane %v2068_v38, 5  ;;  %v5052_v50 = vsel %vm1277_vm11, %v4370_v1, 0  ;;  %v5062_v62 = vsel %vm1277_vm11, %v4960_v18, 0  ;;  %v5091_v38 = vld [vmem:[#allocation2 + $0x44] sm:$0x1] }
 0x175   : > { %4166 = vmatmul.mubr.msk.bf16.gmra.mxu1 %vm1252_vm14, %v3751_v26  ;;  %v2052_v60 = vrot.slane %v2051_v41, 4  ;;  %v2065_v59 = vor.u32 %v2064_v44, %v2061_v34  ;;  %v2074_v32 = vrot.slane %v2072_v45, 4  ;;  %v2083_v0 = vshrl.u32 %v2013_v33, 16 }
 0x176   : > { %4188 = vmatmul.mubr.msk.bf16.gmra.mxu0 %vm1252_vm14, %v3780_v4  ;;  %4169 = vmatprep.mubr.msk.bf16.mxu1 %vm1252_vm14, %v3752_v52  ;;  %v2047_v54 = vsel %vm4797_vm15, %v2042_v46, %v2046_v31  ;;  %v2086_v26 = vshll.u32 %v2013_v33, 16  ;;  %v2092_v1 = vshll.u32 %v5045_v39, 16  ;;  %v2096_v8 = vshrl.u32 %v5045_v39, 16  ;;  %v2022_v46 = vld [vmem:[#allocation2 + $0x48] sm:$0xf] }
 0x177   : > { %4191 = vmatprep.mubr.msk.bf16.mxu0 %vm1252_vm14, %v3781_v27  ;;  %v2057_v18 = vsel %vm4797_vm15, %v2052_v60, %v2056_v42  ;;  %v2066_v24 = vrot.slane %v2065_v59, 4  ;;  %v2075_v4 = vor.u32 %v2074_v32, %v5048_v47  ;;  %v2080_v13 = vrot.slane %v2078_v16, 5 }
 0x178   : > { %v2085_v22 = vrot.slane %v2083_v0, 4  ;;  %v2088_v52 = vrot.slane %v2086_v26, 5  ;;  %v2094_v10 = vrot.slane %v2092_v1, 5  ;;  %v3813_v5 = vcombine.low %v2047_v54, %v2057_v18  ;;  %v5111_v0 = vld [vmem:[#allocation2 + $0x50] sm:$0x1] }
 0x179   : > { %v2076_v3 = vrot.slane %v2075_v4, 4  ;;  %v2098_v29 = vrot.slane %v2096_v8, 4  ;;  %v2102_v57 = vshll.u32 %v5054_v51, 16  ;;  %v2107_v17 = vshrl.u32 %v2016_v7, 16 }
 0x17a   : > { %v2089_v15 = vor.u32 %v2088_v52, %v2085_v22  ;;  %v2110_v2 = vshll.u32 %v2016_v7, 16  ;;  %v2116_v21 = vshll.u32 %v5064_v6, 16  ;;  %v2071_v20 = vsel %vm4797_vm15, %v2066_v24, %v5048_v47  ;;  %v2025_v52 = vld [vmem:[#allocation2 + $0x54] sm:$0xf] }
 0x17b   : > { %v2099_v55 = vor.u32 %v2098_v29, %v2094_v10  ;;  %v2104_v27 = vrot.slane %v2102_v57, 5  ;;  %v2120_v31 = vshrl.u32 %v5064_v6, 16  ;;  %v2081_v12 = vsel %vm4797_vm15, %v2076_v3, %v2080_v13 }
 0x17c   : > { %v2090_v33 = vrot.slane %v2089_v15, 4  ;;  %v2109_v11 = vrot.slane %v2107_v17, 4  ;;  %v2112_v34 = vrot.slane %v2110_v2, 5  ;;  %v2118_v42 = vrot.slane %v2116_v21, 5 }
 0x17d   : > { %4170 = vmatmul.mubr.msk.bf16.gmra.mxu1 %vm1252_vm14, %v3753_v58  ;;  %v2100_v41 = vrot.slane %v2099_v55, 4  ;;  %v2122_v44 = vrot.slane %v2120_v31, 4  ;;  %v2126_v45 = vshll.u32 %v5079_v14, 16  ;;  %v2131_v37 = vshrl.u32 %v2019_v40, 16  ;;  %v5105_v58 = vld [vmem:[#allocation2 + $0x4c] sm:$0xf] }
 0x17e   : > { %4192 = vmatmul.mubr.msk.bf16.gmra.mxu0 %vm1252_vm14, %v3782_v35  ;;  %4173 = vmatprep.mubr.msk.bf16.mxu1 %vm1252_vm14, %v3754_v9  ;;  %v2095_v47 = vsel %vm4797_vm15, %v2090_v33, %v2094_v10  ;;  %v2113_v16 = vor.u32 %v2112_v34, %v2109_v11  ;;  %v2134_v43 = vshll.u32 %v2019_v40, 16  ;;  %v2140_v32 = vshll.u32 %v5087_v19, 16  ;;  %v5115_v10 = vld [vmem:[#allocation2 + $0x58] sm:$0xf]  ;;  %v5125_v40 = vld [vmem:[%s5739_s2 + $0x40] sm:$0x3f]  }
 0x17f   : > { %4215 = vmatprep.mubr.msk.bf16.mxu0 %vm1252_vm14, %v3813_v5  ;;  %v2105_v60 = vsel %vm4797_vm15, %v2100_v41, %v2104_v27  ;;  %v2123_v59 = vor.u32 %v2122_v44, %v2118_v42  ;;  %v2128_v35 = vrot.slane %v2126_v45, 5  ;;  %v3814_v53 = vcombine.low %v2071_v20, %v2081_v12  ;;  %v5127_v20 = vld [vmem:[#allocation2 + $0x5c] sm:$0x1] }
 0x180   : > { %v2114_v9 = vrot.slane %v2113_v16, 4  ;;  %v2133_v7 = vrot.slane %v2131_v37, 4  ;;  %v2136_v54 = vrot.slane %v2134_v43, 5  ;;  %v2142_v1 = vrot.slane %v2140_v32, 5  ;;  %v4371_v44 = vld [vmem:[#allocation2 + $0x18] sm:$0xff]   ;;  %v4373_v32 = vld [vmem:[#allocation2 + $0x24] sm:$0xff]  }
 0x181   : > { %v2124_v26 = vrot.slane %v2123_v59, 4  ;;  %v2144_v18 = vshrl.u32 %v5087_v19, 16  ;;  %v2150_v24 = vshll.u32 %v5091_v38, 16  ;;  %v3815_v4 = vcombine.low %v2095_v47, %v2105_v60 }
 0x182   : > { %v2137_v8 = vor.u32 %v2136_v54, %v2133_v7  ;;  %v2155_v13 = vshrl.u32 %v2022_v46, 16  ;;  %v2158_v22 = vshll.u32 %v2022_v46, 16  ;;  %v2119_v5 = vsel %vm4797_vm15, %v2114_v9, %v2118_v42  ;;  %v2028_v42 = vld [vmem:[#allocation2 + $0x60] sm:$0xf]  ;;  %v5142_v46 = vld [vmem:[#allocation2 + $0x64] sm:$0xf] }
 0x183   : > { %v2129_v3 = vsel %vm4797_vm15, %v2124_v26, %v2128_v35  ;;  %v2146_v29 = vrot.slane %v2144_v18, 4  ;;  %v2164_v57 = vshll.u32 %v5105_v58, 16  ;;  %v2152_v17 = vrot.slane %v2150_v24, 5 }
 0x184   : > { %v2138_v15 = vrot.slane %v2137_v8, 4  ;;  %v2157_v2 = vrot.slane %v2155_v13, 4  ;;  %v2160_v21 = vrot.slane %v2158_v22, 5  ;;  %v2168_v31 = vshrl.u32 %v5105_v58, 16 }
 0x185   : > { %4174 = vmatmul.mubr.msk.bf16.gmra.mxu1 %vm1252_vm14, %v3755_v28  ;;  %v2147_v55 = vor.u32 %v2146_v29, %v2142_v1  ;;  %v2166_v27 = vrot.slane %v2164_v57, 5  ;;  %v2174_v12 = vshll.u32 %v5111_v0, 16  ;;  %v3816_v33 = vcombine.low %v2119_v5, %v2129_v3 }
 0x186   : > { %4216 = vmatmul.mubr.msk.bf16.vlgmr.msra.gmra.mxu0 %vm1252_vm14, %v3814_v53  ;;  %4197 = vmatprep.mubr.msk.bf16.mxu1 %vm1252_vm14, %v4369_v61  ;;  %v2161_v11 = vor.u32 %v2160_v21, %v2157_v2  ;;  %v2179_v34 = vshrl.u32 %v2025_v52, 16  ;;  %v2182_v41 = vshll.u32 %v2025_v52, 16  ;;  %v2143_v30 = vsel %vm4797_vm15, %v2138_v15, %v2142_v1  ;;  %v5150_v1 = vld [vmem:[#allocation2 + $0x68] sm:$0x1]  ;;  %v5157_v52 = vld [vmem:[%s5739_s2 + $0x38] sm:$0x3f]  }
 0x187   : > { %4250 = vmatpush3.bf16.msra.mxu0 %v5062_v62  ;;  %4219 = vmatprep.mubr.msk.bf16.mxu0 %vm1252_vm14, %v3815_v4  ;;  %v2148_v49 = vrot.slane %v2147_v55, 4  ;;  %v2170_v28 = vrot.slane %v2168_v31, 4  ;;  %v2188_v45 = vshll.u32 %v5115_v10, 16  ;;  %v2176_v47 = vrot.slane %v2174_v12, 5 }
 0x188   : > { %v2181_v16 = vrot.slane %v2179_v34, 4  ;;  %v2184_v37 = vrot.slane %v2182_v41, 5  ;;  %v2192_v43 = vshrl.u32 %v5115_v10, 16  ;;  %4312 = vmatprep.subr.msk.bf16.mxu0 %vm1277_vm11, %v5125_v40  ;;  %v2198_v35 = vshll.u32 %v5127_v20, 16 }
 0x189   : > { %v2153_v62 = vsel %vm4797_vm15, %v2148_v49, %v2152_v17  ;;  %v2171_v60 = vor.u32 %v2170_v28, %v2166_v27  ;;  %v2190_v59 = vrot.slane %v2188_v45, 5  ;;  %v2162_v61 = vrot.slane %v2161_v11, 4  ;;  %v4375_v11 = vld [vmem:[#allocation2 + $0x3c] sm:$0xff]   ;;  %v2396_v28 = vld [vmem:[#allocation2 + $0x18] sm:$0xe] }
 0x18a   : > { %v3817_v53 = vcombine.low %v2143_v30, %v2153_v62  ;;  %v2185_v9 = vor.u32 %v2184_v37, %v2181_v16  ;;  %v2194_v7 = vrot.slane %v2192_v43, 4  ;;  %v2200_v26 = vrot.slane %v2198_v35, 5  ;;  %v2395_v30 = vld [vmem:[#allocation2 + $0xc] sm:$0xe] }
 0x18b   : > { %v2172_v54 = vrot.slane %v2171_v60, 4  ;;  %v2203_v18 = vshrl.u32 %v2028_v42, 16  ;;  %v2206_v24 = vshll.u32 %v2028_v42, 16  ;;  %v2212_v13 = vshll.u32 %v5142_v46, 16 }
 0x18c   : > { %v2186_v4 = vrot.slane %v2185_v9, 4  ;;  %v2195_v8 = vor.u32 %v2194_v7, %v2190_v59  ;;  %v2216_v22 = vshrl.u32 %v5142_v46, 16  ;;  %v2167_v29 = vsel %vm4797_vm15, %v2162_v61, %v2166_v27  ;;  %v4374_v27 = vld [vmem:[#allocation2 + $0x30] sm:$0xff]   ;;  %v4379_v9 = vld [vmem:[#allocation2 + $0x18] sm:$0xff]  }
 0x18d   : > { %4198 = vmatmul.mubr.msk.bf16.vlgmr.msra.gmra.mxu1 %vm1252_vm14, %v4371_v44  ;;  %v2205_v5 = vrot.slane %v2203_v18, 4  ;;  %v2208_v3 = vrot.slane %v2206_v24, 5  ;;  %v2214_v15 = vrot.slane %v2212_v13, 5  ;;  %v2177_v17 = vsel %vm4797_vm15, %v2172_v54, %v2176_v47  ;;  %v2397_v47 = vld [vmem:[#allocation2 + $0x24] sm:$0xe] }
 0x18e   : > { %4232 = vmatpush3.bf16.msra.mxu1 %v5052_v50  ;;  %4220 = vmatmul.mubr.msk.bf16.gmra.mxu0 %vm1252_vm14, %v3816_v33  ;;  %v2196_v57 = vrot.slane %v2195_v8, 4  ;;  %v2218_v21 = vrot.slane %v2216_v22, 4  ;;  %v2222_v55 = vshll.u32 %v5150_v1, 16  ;;  %v2191_v50 = vsel %vm4797_vm15, %v2186_v4, %v2190_v59  ;;  %v2399_v24 = vld [vmem:[#allocation2 + $0x3c] sm:$0xe] }
 0x18f   : > { %4201 = vmatprep.mubr.msk.bf16.mxu1 %vm1252_vm14, %v4373_v32  ;;  %4223 = vmatprep.mubr.msk.bf16.mxu0 %vm1252_vm14, %v3817_v53  ;;  %v2209_v2 = vor.u32 %v2208_v3, %v2205_v5  ;;  %v3818_v33 = vcombine.low %v2167_v29, %v2177_v17  ;;  %v2432_v49 = vrot.slane %v4996_v56, 5  ;;  %v2439_v45 = vrot.slane %v5032_v48, 5  ;;  %v4376_v48 = vld [vmem:[#allocation2 + $0x48] sm:$0xff]  }
 0x190   : > { %v2201_v31 = vsel %vm4797_vm15, %v2196_v57, %v2200_v26  ;;  %4311 = vmatprep.subr.msk.bf16.mxu1 %vm1277_vm11, %v5157_v52  ;;  %v2219_v12 = vor.u32 %v2218_v21, %v2214_v15  ;;  %v2224_v44 = vrot.slane %v2222_v55, 5  ;;  %v2446_v16 = vrot.slane %v5045_v39, 5  ;;  %v4377_v39 = vld [vmem:[#allocation2 + $0x54] sm:$0xff]   ;;  %v2398_v26 = vld [vmem:[#allocation2 + $0x30] sm:$0xe] }
 0x191   : > { %v3819_v34 = vcombine.low %v2191_v50, %v2201_v31  ;;  %v2210_v41 = vrot.slane %v2209_v2, 4  ;;  %v3832_v62 = vrot.slane %v2395_v30, 9  ;;  %v2435_v56 = vrot.slane %v5001_v63, 5  ;;  %v2401_v21 = vld [vmem:[#allocation2 + $0x54] sm:$0xe]  ;;  %v4378_v50 = vld [vmem:[#allocation2 + $0x60] sm:$0xff]  }
 0x192   : > { %v2220_v42 = vrot.slane %v2219_v12, 4  ;;  %v3833_v60 = vrot.slane %v2396_v28, 9  ;;  %v2434_v59 = vrot.slane %v2432_v49, 4  ;;  %v2441_v35 = vrot.slane %v2439_v45, 4  ;;  %v4380_v31 = vld [vmem:[#allocation2 + $0x24] sm:$0xff]  }
 0x193   : > { %v2215_v37 = vsel %vm4797_vm15, %v2210_v41, %v2214_v15  ;;  %v2442_v32 = vrot.slane %v5039_v23, 5  ;;  %v3834_v53 = vrot.slane %v2397_v47, 9  ;;  %v2448_v7 = vrot.slane %v2446_v16, 4  ;;  %v2861_v41 = vld [vmem:[#allocation2 + $0x1c] sm:$0xf] }
 0x194   : > { %v2225_v43 = vsel %vm4797_vm15, %v2220_v42, %v2224_v44  ;;  %v2449_v54 = vrot.slane %v5054_v51, 5  ;;  %v2453_v18 = vrot.slane %v5064_v6, 5  ;;  %v2460_v4 = vrot.slane %v5087_v19, 5  ;;  %v2400_v19 = vld [vmem:[#allocation2 + $0x48] sm:$0xe] }
 0x195   : > { %4202 = vmatmul.mubr.msk.bf16.gmra.mxu1 %vm1252_vm14, %v4374_v27  ;;  %v3820_v61 = vcombine.low %v2215_v37, %v2225_v43  ;;  %v2433_v63 = vsel %vm4922_vm2, %v3832_v62, %v2432_v49  ;;  %v2436_v23 = vsel %vm4922_vm2, %v2434_v59, %v2435_v56  ;;  %v5198_v8 = vsel %vm4922_vm2, %v3833_v60, %v2439_v45  ;;  %v2402_v49 = vld [vmem:[#allocation2 + $0x60] sm:$0xe]  ;;  %v5246_v28 = vld [vmem:[#allocation2 + $0x20] sm:$0x1]  ;;  %v3248_v37 = vld [vmem:[#allocation2 + $0x18] sm:$0xe] }
 0x196   : > { %4224 = vmatmul.mubr.msk.bf16.gmra.mxu0 %vm1252_vm14, %v3818_v33  ;;  %4205 = vmatprep.mubr.msk.bf16.mxu1 %vm1252_vm14, %v4375_v11  ;;  %v5202_v51 = vsel %vm4922_vm2, %v2441_v35, %v2442_v32  ;;  %v5206_v6 = vsel %vm4922_vm2, %v3834_v53, %v2446_v16  ;;  %v5212_v13 = vsel %vm4922_vm2, %v2448_v7, %v2449_v54  ;;  %v3835_v22 = vrot.slane %v2398_v26, 9  ;;  %v3249_v62 = vld [vmem:[#allocation2 + $0x24] sm:$0xe] }
 0x197   : > { %4227 = vmatprep.mubr.msk.bf16.mxu0 %vm1252_vm14, %v3819_v34  ;;  %v2456_v5 = vrot.slane %v5079_v14, 5  ;;  %v3836_v3 = vrot.slane %v2399_v24, 9  ;;  %v2455_v29 = vrot.slane %v2453_v18, 4  ;;  %v2462_v57 = vrot.slane %v2460_v4, 4  ;;  %v2863_v7 = vld [vmem:[#allocation2 + $0x24] sm:$0xf] }
 0x198   : > { %v2463_v15 = vrot.slane %v5091_v38, 5  ;;  %v2467_v17 = vrot.slane %v5105_v58, 5  ;;  %v3837_v2 = vrot.slane %v2400_v19, 9  ;;  %v2474_v55 = vrot.slane %v5115_v10, 5  ;;  %v4383_v38 = vld [vmem:[#allocation2 + $0x30] sm:$0xff]  }
 0x199   : > { %v3840_v27 = vcombine.low %v2433_v63, %v2436_v23  ;;  %v3841_v12 = vcombine.low %v5198_v8, %v5202_v51  ;;  %v5223_v14 = vsel %vm1277_vm11, %v5157_v52, 0  ;;  %v3393_v33 = vsel %vm1277_vm11, %v5125_v40, 0  ;;  %v2860_v52 = vld [vmem:[#allocation2 + $0x18] sm:$0xf]  ;;  %v5276_v63 = vld [vmem:[#allocation2 + $0x2c] sm:$0x1] }
 0x19a   : > { %v3842_v58 = vcombine.low %v5206_v6, %v5212_v13  ;;  %v5231_v10 = vsel %vm4922_vm2, %v3835_v22, %v2453_v18  ;;  %v5235_v11 = vsel %vm4922_vm2, %v3836_v3, %v2460_v4  ;;  %v2470_v34 = vrot.slane %v5111_v0, 5 }
 0x19b   : > { %v5240_v42 = vsel %vm4922_vm2, %v2455_v29, %v2456_v5  ;;  %v5244_v40 = vsel %vm4922_vm2, %v2462_v57, %v2463_v15  ;;  %v2469_v44 = vrot.slane %v2467_v17, 4  ;;  %v3838_v30 = vrot.slane %v2401_v21, 9  ;;  %v4384_v5 = vld [vmem:[#allocation2 + $0x3c] sm:$0xff]   ;;  %v4385_v15 = vld [vmem:[#allocation2 + $0x48] sm:$0xff]  }
 0x19c   : > { %v5250_v45 = vsel %vm4922_vm2, %v3837_v2, %v2467_v17  ;;  %v2476_v0 = vrot.slane %v2474_v55, 4  ;;  %v2477_v47 = vrot.slane %v5127_v20, 5  ;;  %v2481_v16 = vrot.slane %v5142_v46, 5 }
 0x19d   : > { %4206 = vmatmul.mubr.msk.bf16.gmra.mxu1 %vm1252_vm14, %v4376_v48  ;;  %v3285_v43 = vrot.slane %v2861_v41, 5  ;;  %v2888_v56 = vshrl.u32 %v2860_v52, 16  ;;  %v2891_v60 = vshll.u32 %v2860_v52, 16  ;;  %v2897_v48 = vshll.u32 %v2861_v41, 16 }
 0x19e   : > { %4228 = vmatmul.mubr.msk.bf16.gmra.mxu0 %vm1252_vm14, %v3820_v61  ;;  %4209 = vmatprep.mubr.msk.bf16.mxu1 %vm1252_vm14, %v4377_v39  ;;  %v3843_v59 = vcombine.low %v5231_v10, %v5240_v42  ;;  %v3844_v20 = vcombine.low %v5235_v11, %v5244_v40  ;;  %v3839_v35 = vrot.slane %v2402_v49, 9  ;;  %v2901_v46 = vshrl.u32 %v2861_v41, 16 }
 0x19f   : > { %4251 = vmatprep.mubr.msk.bf16.mxu0 %vm1252_vm14, %v4379_v9  ;;  %v5264_v32 = vsel %vm4922_vm2, %v2469_v44, %v2470_v34  ;;  %v5268_v53 = vsel %vm4922_vm2, %v3838_v30, %v2474_v55  ;;  %v2484_v61 = vrot.slane %v5150_v1, 5  ;;  %v3897_v39 = vrot.slane %v3248_v37, 9  ;;  %v2864_v9 = vld [vmem:[#allocation2 + $0x28] sm:$0xf]  ;;  %v2866_v34 = vld [vmem:[#allocation2 + $0x30] sm:$0xf] }
 0x1a0   : > { %v5273_v54 = vsel %vm4922_vm2, %v2476_v0, %v2477_v47  ;;  %v2483_v26 = vrot.slane %v2481_v16, 4  ;;  %v3288_v18 = vrot.slane %v5246_v28, 5  ;;  %v3898_v24 = vrot.slane %v3249_v62, 9  ;;  %v3250_v0 = vld [vmem:[#allocation2 + $0x30] sm:$0xe] }
 0x1a1   : > { %v3287_v4 = vrot.slane %v3285_v43, 4  ;;  %v2890_v23 = vrot.slane %v2888_v56, 4  ;;  %v2893_v19 = vrot.slane %v2891_v60, 5  ;;  %v5278_v22 = vrot.slane %v2897_v48, 5 }
 0x1a2   : > { %v2903_v1 = vrot.slane %v2901_v46, 4  ;;  %v2912_v3 = vshrl.u32 %v2863_v7, 16  ;;  %v2915_v29 = vshll.u32 %v2863_v7, 16  ;;  %v2921_v57 = vshll.u32 %v2864_v9, 16  ;;  %v4386_v46 = vld [vmem:[#allocation2 + $0x54] sm:$0xff]  }
 0x1a3   : > { %v3845_v17 = vcombine.low %v5250_v45, %v5264_v32  ;;  %v3846_v2 = vcombine.low %v5268_v53, %v5273_v54  ;;  %v3292_v21 = vrot.slane %v2864_v9, 5  ;;  %v2925_v55 = vshrl.u32 %v2864_v9, 16  ;;  %v5393_v32 = vld [vmem:[#allocation2 + $0x5c] sm:$0x1] }
 0x1a4   : > { %v5303_v41 = vsel %vm4922_vm2, %v3287_v4, %v3288_v18  ;;  %v2894_v44 = vor.u32 %v2893_v19, %v2890_v23  ;;  %v2907_v30 = vshll.u32 %v5246_v28, 16  ;;  %v2904_v49 = vor.u32 %v2903_v1, %v5278_v22  ;;  %v5320_v28 = vld [vmem:[#allocation2 + $0x38] sm:$0x1]  ;;  %v2870_v4 = vld [vmem:[#allocation2 + $0x40] sm:$0xf] }
 0x1a5   : > { %4210 = vmatmul.mubr.msk.bf16.gmra.mxu1 %vm1252_vm14, %v4378_v50  ;;  %v5286_v50 = vsel %vm4922_vm2, %v3839_v35, %v2481_v16  ;;  %v5307_v52 = vsel %vm4922_vm2, %v3898_v24, %v3292_v21  ;;  %v2914_v8 = vrot.slane %v2912_v3, 4  ;;  %v2917_v51 = vrot.slane %v2915_v29, 5  ;;  %v2869_v35 = vld [vmem:[#allocation2 + $0x3c] sm:$0xf] }
 0x1a6   : > { %4252 = vmatmul.mubr.msk.bf16.vlgmr.msra.gmra.mxu0 %vm1252_vm14, %v4380_v31  ;;  %4233 = vmatprep.mubr.msk.bf16.mxu1 %vm1252_vm14, %v3840_v27  ;;  %v5290_v31 = vsel %vm4922_vm2, %v2483_v26, %v2484_v61  ;;  %v5294_v27 = vsel %vm4922_vm2, %v3897_v39, %v3285_v43  ;;  %v2927_v47 = vrot.slane %v2925_v55, 4  ;;  %v2936_v16 = vshrl.u32 %v2866_v34, 16  ;;  %v4387_v26 = vld [vmem:[#allocation2 + $0x60] sm:$0xff]  }
 0x1a7   : > { %4286 = vmatpush3.bf16.msra.mxu0 %v3393_v33  ;;  %4255 = vmatprep.mubr.msk.bf16.mxu0 %vm1252_vm14, %v4383_v38  ;;  %v3295_v33 = vrot.slane %v5276_v63, 5  ;;  %v2867_v38 = vld [vmem:[#allocation2 + $0x34] sm:$0xf]  ;;  %v2939_v37 = vshll.u32 %v2866_v34, 16  ;;  %v3847_v43 = vcombine.low %v5286_v50, %v5290_v31  ;;  %v3294_v62 = vrot.slane %v3292_v21, 4 }
 0x1a8   : > { %v2945_v56 = vshll.u32 %v2867_v38, 16  ;;  %v2949_v60 = vshrl.u32 %v2867_v38, 16  ;;  %v3905_v48 = vcombine.low %v5294_v27, %v5303_v41  ;;  %v2895_v6 = vrot.slane %v2894_v44, 4  ;;  %v2871_v55 = vld [vmem:[#allocation2 + $0x44] sm:$0x1] }
 0x1a9   : > { %v2931_v13 = vshll.u32 %v5276_v63, 16  ;;  %v2905_v61 = vrot.slane %v2904_v49, 4  ;;  %v2909_v39 = vrot.slane %v2907_v30, 5  ;;  %v2918_v9 = vor.u32 %v2917_v51, %v2914_v8  ;;  %v4388_v8 = vld [vmem:[#allocation2 + $0x6c] sm:$0xff]  }
 0x1aa   : > { %v3302_v7 = vrot.slane %v5320_v28, 5  ;;  %v2938_v23 = vrot.slane %v2936_v16, 4  ;;  %v2941_v19 = vrot.slane %v2939_v37, 5  ;;  %v2951_v1 = vrot.slane %v2949_v60, 4  ;;  %v2873_v16 = vld [vmem:[#allocation2 + $0x4c] sm:$0xf] }
 0x1ab   : > { %v2960_v3 = vshrl.u32 %v2869_v35, 16  ;;  %v2963_v63 = vshll.u32 %v2869_v35, 16  ;;  %v5337_v29 = vsel %vm4922_vm2, %v3294_v62, %v3295_v33  ;;  %v2910_v10 = vsel %vm4797_vm15, %v2905_v61, %v2909_v39  ;;  %v5371_v60 = vld [vmem:[#allocation2 + $0x50] sm:$0x1]  ;;  %v5375_v61 = vld [vmem:[#allocation2 + $0x58] sm:$0xf] }
 0x1ac   : > { %v2919_v42 = vrot.slane %v2918_v9, 4  ;;  %v2969_v33 = vshll.u32 %v2870_v4, 16  ;;  %v3306_v44 = vrot.slane %v2870_v4, 5  ;;  %v2955_v30 = vshll.u32 %v5320_v28, 16 }
 0x1ad   : > { %4234 = vmatmul.mubr.msk.bf16.vlgmr.msra.gmra.mxu1 %vm1252_vm14, %v3841_v12  ;;  %v5313_v12 = vrot.slane %v2921_v57, 5  ;;  %v2900_v57 = vsel %vm4797_vm15, %v2895_v6, %v5278_v22  ;;  %v2973_v22 = vshrl.u32 %v2870_v4, 16  ;;  %v2942_v11 = vor.u32 %v2941_v19, %v2938_v23  ;;  %v2872_v6 = vld [vmem:[#allocation2 + $0x48] sm:$0xf] }
 0x1ae   : > { %4268 = vmatpush3.bf16.msra.mxu1 %v5223_v14  ;;  %4256 = vmatmul.mubr.msk.bf16.gmra.mxu0 %vm1252_vm14, %v4384_v5  ;;  %v3299_v14 = vrot.slane %v2867_v38, 5  ;;  %v5329_v5 = vrot.slane %v2945_v56, 5  ;;  %v2965_v49 = vrot.slane %v2963_v63, 5  ;;  %v3906_v51 = vcombine.low %v5307_v52, %v5337_v29  ;;  %v3253_v63 = vld [vmem:[#allocation2 + $0x54] sm:$0xe] }
 0x1af   : > { %4237 = vmatprep.mubr.msk.bf16.mxu1 %vm1252_vm14, %v3842_v58  ;;  %4259 = vmatprep.mubr.msk.bf16.mxu0 %vm1252_vm14, %v4385_v15  ;;  %v3899_v58 = vrot.slane %v3250_v0, 9  ;;  %v2928_v18 = vor.u32 %v2927_v47, %v5313_v12  ;;  %v2933_v15 = vrot.slane %v2931_v13, 5  ;;  %v5362_v0 = vcombine.low %v2900_v57, %v2910_v10 }
 0x1b0   : > { %v3301_v24 = vrot.slane %v3299_v14, 4  ;;  %v2952_v40 = vor.u32 %v2951_v1, %v5329_v5  ;;  %v2924_v37 = vsel %vm4797_vm15, %v2919_v42, %v5313_v12  ;;  %v5369_v62 = vrot.slane %v2969_v33, 5 }
 0x1b1   : > { %v5344_v21 = vsel %vm4922_vm2, %v3899_v58, %v3299_v14  ;;  %v2929_v38 = vrot.slane %v2928_v18, 4  ;;  %v3309_v14 = vrot.slane %v2871_v55, 5  ;;  %v2975_v56 = vrot.slane %v2973_v22, 4 }
 0x1b2   : > { %v5356_v34 = vsel %vm4922_vm2, %v3301_v24, %v3302_v7  ;;  %v3308_v58 = vrot.slane %v3306_v44, 4  ;;  %v2957_v35 = vrot.slane %v2955_v30, 5  ;;  %v2943_v39 = vrot.slane %v2942_v11, 4  ;;  %v3252_v7 = vld [vmem:[#allocation2 + $0x48] sm:$0xe] }
 0x1b3   : > { %v3907_v28 = vcombine.low %v5344_v21, %v5356_v34  ;;  %v2934_v13 = vsel %vm4797_vm15, %v2929_v38, %v2933_v15  ;;  %v2953_v9 = vrot.slane %v2952_v40, 4  ;;  %v2984_v18 = vshrl.u32 %v2872_v6, 16 }
 0x1b4   : > { %v2987_v24 = vshll.u32 %v2872_v6, 16  ;;  %v2993_v4 = vshll.u32 %v2873_v16, 16  ;;  %v2997_v23 = vshrl.u32 %v2873_v16, 16  ;;  %v5386_v19 = vcombine.low %v2924_v37, %v2934_v13 }
 0x1b5   : > { %4238 = vmatmul.mubr.msk.bf16.gmra.mxu1 %vm1252_vm14, %v3843_v59  ;;  %v3251_v59 = vld [vmem:[#allocation2 + $0x3c] sm:$0xe]  ;;  %v2976_v45 = vor.u32 %v2975_v56, %v5369_v62  ;;  %v5402_v53 = vsel %vm4922_vm2, %v3308_v58, %v3309_v14  ;;  %v2948_v57 = vsel %vm4797_vm15, %v2943_v39, %v5329_v5  ;;  %v2958_v15 = vsel %vm4797_vm15, %v2953_v9, %v2957_v35  ;;  %v2879_v14 = vld [vmem:[#allocation2 + $0x64] sm:$0xf]  ;;  %v2880_v58 = vld [vmem:[#allocation2 + $0x68] sm:$0x1] }
 0x1b6   : > { %4260 = vmatmul.mubr.msk.bf16.gmra.mxu0 %vm1252_vm14, %v4386_v46  ;;  %4241 = vmatprep.mubr.msk.bf16.mxu1 %vm1252_vm14, %v3844_v20  ;;  %v2962_v20 = vrot.slane %v2960_v3, 4  ;;  %v3900_v47 = vrot.slane %v3251_v59, 9  ;;  %v2979_v46 = vshll.u32 %v2871_v55, 16  ;;  %v3316_v3 = vrot.slane %v5371_v60, 5  ;;  %v2875_v59 = vld [vmem:[#allocation2 + $0x54] sm:$0xf] }
 0x1b7   : > { %4263 = vmatprep.mubr.msk.bf16.mxu0 %vm1252_vm14, %v4387_v26  ;;  %v3313_v26 = vrot.slane %v2873_v16, 5  ;;  %v2986_v41 = vrot.slane %v2984_v18, 4  ;;  %v5410_v10 = vrot.slane %v2993_v4, 5  ;;  %v2999_v42 = vrot.slane %v2997_v23, 4  ;;  %v2878_v16 = vld [vmem:[#allocation2 + $0x60] sm:$0xf] }
 0x1b8   : > { %v2966_v12 = vor.u32 %v2965_v49, %v2962_v20  ;;  %v5390_v1 = vsel %vm4922_vm2, %v3900_v47, %v3306_v44  ;;  %v2981_v54 = vrot.slane %v2979_v46, 5  ;;  %v2977_v33 = vrot.slane %v2976_v45, 4  ;;  %v2881_v45 = vld [vmem:[#allocation2 + $0x6c] sm:$0xf] }
 0x1b9   : > { %v3315_v27 = vrot.slane %v3313_v26, 4  ;;  %v3902_v22 = vrot.slane %v3253_v63, 9  ;;  %v3323_v44 = vrot.slane %v5393_v32, 5  ;;  %v3908_v30 = vcombine.low %v5390_v1, %v5402_v53 }
 0x1ba   : > { %v2967_v55 = vrot.slane %v2966_v12, 4  ;;  %v3880_v5 = vcombine.low %v2948_v57, %v2958_v15  ;;  %v3003_v40 = vshll.u32 %v5371_v60, 16  ;;  %v3011_v47 = vshll.u32 %v2875_v59, 16  ;;  %v3255_v57 = vld [vmem:[#allocation2 + $0x6c] sm:$0xe] }
 0x1bb   : > { %v3317_v49 = vsel %vm4922_vm2, %v3315_v27, %v3316_v3  ;;  %v3000_v56 = vor.u32 %v2999_v42, %v5410_v10  ;;  %v3017_v60 = vshll.u32 %v5375_v61, 16  ;;  %v3021_v6 = vshrl.u32 %v5375_v61, 16 }
 0x1bc   : > { %v2972_v20 = vsel %vm4797_vm15, %v2967_v55, %v5369_v62  ;;  %v2982_v50 = vsel %vm4797_vm15, %v2977_v33, %v2981_v54  ;;  %v3005_v52 = vrot.slane %v3003_v40, 5  ;;  %v3032_v29 = vshrl.u32 %v2878_v16, 16  ;;  %v2883_v55 = vld [vmem:[#allocation2 + $0x74] sm:$0x1] }
 0x1bd   : > { %4242 = vmatmul.mubr.msk.bf16.gmra.mxu1 %vm1252_vm14, %v3845_v17  ;;  %v3320_v17 = vrot.slane %v5375_v61, 5  ;;  %v3013_v13 = vrot.slane %v3011_v47, 5  ;;  %v3327_v35 = vrot.slane %v2879_v14, 5  ;;  %v3045_v46 = vshrl.u32 %v2879_v14, 16 }
 0x1be   : > { %4264 = vmatmul.mubr.msk.bf16.gmra.mxu0 %vm1252_vm14, %v4388_v8  ;;  %4245 = vmatprep.mubr.msk.bf16.mxu1 %vm1252_vm14, %v3846_v2  ;;  %v3901_v2 = vrot.slane %v3252_v7, 9  ;;  %v3008_v8 = vshrl.u32 %v2875_v59, 16  ;;  %v3001_v39 = vrot.slane %v3000_v56, 4  ;;  %v5450_v9 = vrot.slane %v3017_v60, 5  ;;  %v3254_v7 = vld [vmem:[#allocation2 + $0x60] sm:$0xe] }
 0x1bf   : > { %4287 = vmatprep.mubr.msk.bf16.mxu0 %vm1252_vm14, %v3905_v48  ;;  %v2989_v48 = vrot.slane %v2987_v24, 5  ;;  %v3322_v38 = vrot.slane %v3320_v17, 4  ;;  %v5440_v31 = vsel %vm4922_vm2, %v3902_v22, %v3320_v17  ;;  %v3023_v12 = vrot.slane %v3021_v6, 4 }
 0x1c0   : > { %v3314_v11 = vsel %vm4922_vm2, %v3901_v2, %v3313_v26  ;;  %v3010_v62 = vrot.slane %v3008_v8, 4  ;;  %v3881_v26 = vcombine.low %v2972_v20, %v2982_v50  ;;  %v3027_v34 = vshll.u32 %v5393_v32, 16 }
 0x1c1   : > { %v2990_v37 = vor.u32 %v2989_v48, %v2986_v41  ;;  %v3909_v18 = vcombine.low %v3314_v11, %v3317_v49  ;;  %v3034_v24 = vrot.slane %v3032_v29, 4  ;;  %v3047_v1 = vrot.slane %v3045_v46, 4 }
 0x1c2   : > { %v3014_v17 = vor.u32 %v3013_v13, %v3010_v62  ;;  %v3903_v53 = vrot.slane %v3254_v7, 9  ;;  %v3329_v54 = vrot.slane %v3327_v35, 4  ;;  %v3330_v2 = vrot.slane %v2880_v58, 5 }
 0x1c3   : > { %v2991_v61 = vrot.slane %v2990_v37, 4  ;;  %v3006_v32 = vsel %vm4797_vm15, %v3001_v39, %v3005_v52  ;;  %v3024_v63 = vor.u32 %v3023_v12, %v5450_v9  ;;  %v3056_v27 = vshrl.u32 %v2881_v45, 16 }
 0x1c4   : > { %v3059_v41 = vshll.u32 %v2881_v45, 16  ;;  %v3029_v42 = vrot.slane %v3027_v34, 5  ;;  %v3051_v33 = vshll.u32 %v2880_v58, 16  ;;  %v3015_v22 = vrot.slane %v3014_v17, 4 }
 0x1c5   : > { %4246 = vmatmul.mubr.msk.bf16.gmra.mxu1 %vm1252_vm14, %v3847_v43  ;;  %v5444_v43 = vsel %vm4922_vm2, %v3322_v38, %v3323_v44  ;;  %v2996_v3 = vsel %vm4797_vm15, %v2991_v61, %v5410_v10  ;;  %v3328_v38 = vsel %vm4922_vm2, %v3903_v53, %v3327_v35  ;;  %v3331_v44 = vsel %vm4922_vm2, %v3329_v54, %v3330_v2 }
 0x1c6   : > { %4288 = vmatmul.mubr.msk.bf16.vlgmr.msra.gmra.mxu0 %vm1252_vm14, %v3906_v51  ;;  %4269 = vmatprep.mubr.msk.bf16.mxu1 %vm1252_vm14, %v5362_v0  ;;  %v3035_v51 = vshll.u32 %v2878_v16, 16  ;;  %v3041_v0 = vshll.u32 %v2879_v14, 16  ;;  %v3910_v21 = vcombine.low %v5440_v31, %v5444_v43  ;;  %v3025_v11 = vrot.slane %v3024_v63, 4 }
 0x1c7   : > { %4291 = vmatprep.mubr.msk.bf16.mxu0 %vm1252_vm14, %v3907_v28  ;;  %v2882_v28 = vld [vmem:[#allocation2 + $0x70] sm:$0xf]  ;;  %v3337_v20 = vrot.slane %v2883_v55, 5  ;;  %v3058_v49 = vrot.slane %v3056_v27, 4  ;;  %v3061_v8 = vrot.slane %v3059_v41, 5  ;;  %v3911_v16 = vcombine.low %v3328_v38, %v3331_v44 }
 0x1c8   : > { %v3037_v4 = vrot.slane %v3035_v51, 5  ;;  %v3043_v23 = vrot.slane %v3041_v0, 5  ;;  %v3334_v15 = vrot.slane %v2882_v28, 5  ;;  %v3065_v48 = vshll.u32 %v2882_v28, 16 }
 0x1c9   : > { %v3053_v60 = vrot.slane %v3051_v33, 5  ;;  %v3020_v6 = vsel %vm4797_vm15, %v3015_v22, %v5450_v9  ;;  %v3030_v50 = vsel %vm4797_vm15, %v3025_v11, %v3029_v42  ;;  %v3062_v52 = vor.u32 %v3061_v8, %v3058_v49 }
 0x1ca   : > { %v3038_v10 = vor.u32 %v3037_v4, %v3034_v24  ;;  %v3048_v59 = vor.u32 %v3047_v1, %v3043_v23  ;;  %v3336_v40 = vrot.slane %v3334_v15, 4  ;;  %v3067_v47 = vrot.slane %v3065_v48, 5 }
 0x1cb   : > { %v3075_v51 = vshll.u32 %v2883_v55, 16  ;;  %v3883_v13 = vcombine.low %v3020_v6, %v3030_v50  ;;  %v3063_v46 = vrot.slane %v3062_v52, 4  ;;  %vm3572_vm3 = vcmask 27648  }
 0x1cc   : > { %v3039_v37 = vrot.slane %v3038_v10, 4  ;;  %v3049_v56 = vrot.slane %v3048_v59, 4  ;;  %v3338_v43 = vsel %vm4922_vm2, %v3336_v40, %v3337_v20 }
 0x1cd   : > { %4270 = vmatmul.mubr.msk.bf16.vlgmr.msra.gmra.mxu1 %vm1252_vm14, %v5386_v19  ;;  %v3069_v19 = vshrl.u32 %v2882_v28, 16  ;;  %v3077_v39 = vrot.slane %v3075_v51, 5  ;;  %v3068_v25 = vsel %vm4797_vm15, %v3063_v46, %v3067_v47 }
 0x1ce   : > { %4292 = vmatmul.mubr.msk.bf16.gmra.mxu0 %vm1252_vm14, %v3908_v30  ;;  %4273 = vmatprep.mubr.msk.bf16.mxu1 %vm1252_vm14, %v3880_v5  ;;  %v3904_v30 = vrot.slane %v3255_v57, 9  ;;  %v3882_v5 = vcombine.low %v2996_v3, %v3006_v32  ;;  %v3044_v0 = vsel %vm4797_vm15, %v3039_v37, %v3043_v23  ;;  %v3054_v62 = vsel %vm4797_vm15, %v3049_v56, %v3053_v60 }
 0x1cf   : > { %4295 = vmatprep.mubr.msk.bf16.mxu0 %vm1252_vm14, %v3909_v18  ;;  %v3071_v14 = vrot.slane %v3069_v19, 4  ;;  %v3884_v35 = vcombine.low %v3044_v0, %v3054_v62 }
 0x1d0   : > { %v3335_v31 = vsel %vm4922_vm2, %v3904_v30, %v3334_v15 }
 0x1d1   : > { %v3072_v29 = vor.u32 %v3071_v14, %v3067_v47  ;;  %v3912_v58 = vcombine.low %v3335_v31, %v3338_v43 }
 0x1d3   : > { %v3073_v61 = vrot.slane %v3072_v29, 4 }
 0x1d5   : > { %4274 = vmatmul.mubr.msk.bf16.gmra.mxu1 %vm1252_vm14, %v3881_v26  ;;  %v3078_v9 = vsel %vm4797_vm15, %v3073_v61, %v3077_v39 }
 0x1d6   : > { %4296 = vmatmul.mubr.msk.bf16.gmra.mxu0 %vm1252_vm14, %v3910_v21  ;;  %4277 = vmatprep.mubr.msk.bf16.mxu1 %vm1252_vm14, %v3882_v5  ;;  %v3885_v12 = vcombine.low %v3068_v25, %v3078_v9 }
 0x1d7   : > { %4299 = vmatprep.mubr.msk.bf16.mxu0 %vm1252_vm14, %v3911_v16 }
 0x1dd   : > { %4278 = vmatmul.mubr.msk.bf16.gmra.mxu1 %vm1252_vm14, %v3883_v13 }
 0x1de   : > { %4300 = vmatmul.mubr.msk.bf16.gmra.mxu0 %vm1252_vm14, %v3912_v58  ;;  %4281 = vmatprep.mubr.msk.bf16.mxu1 %vm1252_vm14, %v3884_v35 }
 0x1e5   : > { %4282 = vmatmul.mubr.msk.bf16.gmra.mxu1 %vm1252_vm14, %v3885_v12 }
 0x20a   : > { %v4145_v7 = vpop.f32.mrf.mxu1 }
 0x20c   : > { %v1315_v26 = vpop.f32.mrf.mxu1 }
 0x20e   : > { %v4146_v18 = vpop.f32.mrf.mxu1 }
 0x210   : > { %v1318_v21 = vpop.f32.mrf.mxu1 }
 0x214   : > { %v4149_v34 = vpop.f32.mrf.mxu1 }
 0x216   : > { %v1331_v28 = vpop.f32.mrf.mxu1 }
 0x218   : > { %v4150_v24 = vpop.f32.mrf.mxu1 }
 0x21a   : > { %v1334_v4 = vpop.f32.mrf.mxu1 }
 0x21c   : > { %v4153_v23 = vpop.f32.mrf.mxu1 }
 0x21e   : > { %v1347_v1 = vpop.f32.mrf.mxu1 }
 0x220   : > { %v4154_v45 = vpop.f32.mrf.mxu1 }
 0x222   : > { %v1350_v17 = vpop.f32.mrf.mxu1 }
 0x225   : > { %v4157_v53 = vpop.f32.mrf.mxu1 }
 0x226   : > { %v4181_v54 = vpop.f32.mrf.mxu0 }
 0x227   : > { %v1363_v2 = vpop.f32.mrf.mxu1 }
 0x228   : > { %v1723_v36 = vpop.f32.mrf.mxu0 }
 0x229   : > { %v4158_v3 = vpop.f32.mrf.mxu1 }
 0x22a   : > { %v4182_v32 = vpop.f32.mrf.mxu0 }
 0x22b   : > { %v1366_v63 = vpop.f32.mrf.mxu1 }
 0x22c   : > { %v1726_v57 = vpop.f32.mrf.mxu0 }
 0x22d   : > { %v4163_v15 = vpop.f32.mrf.mxu1 }
 0x22e   : > { %v1493_v55 = vadd.f32 %v4163_v15, %v4145_v7  ;;  %v4185_v27 = vpop.f32.mrf.mxu0 }
 0x22f   : > { %v1484_v41 = vpop.f32.mrf.mxu1 }
 0x230   : > { %v1485_v48 = vadd.f32 %v1484_v41, %v1315_v26  ;;  %v1739_v19 = vpop.f32.mrf.mxu0  ;;  %v5495_v42 = vadd.f32 %v4181_v54, %v1493_v55 }
 0x231   : > { %v4164_v10 = vpop.f32.mrf.mxu1 }
 0x232   : > { %v1496_v59 = vadd.f32 %v4164_v10, %v4146_v18  ;;  %v4186_v33 = vpop.f32.mrf.mxu0  ;;  %v5497_v22 = vadd.f32 %v1723_v36, %v1485_v48 }
 0x233   : > { %v1487_v38 = vpop.f32.mrf.mxu1 }
 0x234   : > { %v1488_v44 = vadd.f32 %v1487_v38, %v1318_v21  ;;  %v1742_v30 = vpop.f32.mrf.mxu0  ;;  %v5499_v5 = vadd.f32 %v4182_v32, %v1496_v59 }
 0x235   : > { %v4167_v11 = vpop.f32.mrf.mxu1 }
 0x236   : > { %v1509_v40 = vadd.f32 %v4167_v11, %v4149_v34  ;;  %v4189_v20 = vpop.f32.mrf.mxu0  ;;  %v5501_v49 = vadd.f32 %v1726_v57, %v1488_v44 }
 0x237   : > { %v1500_v8 = vpop.f32.mrf.mxu1 }
 0x238   : > { %v1501_v47 = vadd.f32 %v1500_v8, %v1331_v28  ;;  %v1755_v14 = vpop.f32.mrf.mxu0  ;;  %v5503_v16 = vadd.f32 %v4185_v27, %v1509_v40 }
 0x239   : > { %v4168_v37 = vpop.f32.mrf.mxu1 }
 0x23a   : > { %v1512_v56 = vadd.f32 %v4168_v37, %v4150_v24  ;;  %v4190_v60 = vpop.f32.mrf.mxu0  ;;  %v5505_v6 = vadd.f32 %v1739_v19, %v1501_v47 }
 0x23b   : > { %v1503_v50 = vpop.f32.mrf.mxu1 }
 0x23c   : > { %v1504_v31 = vadd.f32 %v1503_v50, %v1334_v4  ;;  %v1758_v43 = vpop.f32.mrf.mxu0  ;;  %v5507_v52 = vadd.f32 %v4186_v33, %v1512_v56 }
 0x23d   : > { %v4171_v29 = vpop.f32.mrf.mxu1 }
 0x23e   : > { %v1525_v51 = vadd.f32 %v4171_v29, %v4153_v23  ;;  %v4193_v0 = vpop.f32.mrf.mxu0  ;;  %v5509_v62 = vadd.f32 %v1742_v30, %v1504_v31 }
 0x23f   : > { %v1516_v13 = vpop.f32.mrf.mxu1 }
 0x240   : > { %v1517_v58 = vadd.f32 %v1516_v13, %v1347_v1  ;;  %v1771_v35 = vpop.f32.mrf.mxu0  ;;  %v5511_v46 = vadd.f32 %v4189_v20, %v1525_v51 }
 0x241   : > { %v4172_v61 = vpop.f32.mrf.mxu1 }
 0x242   : > { %v1528_v39 = vadd.f32 %v4172_v61, %v4154_v45  ;;  %v4194_v25 = vpop.f32.mrf.mxu0  ;;  %v5513_v9 = vadd.f32 %v1755_v14, %v1517_v58 }
 0x243   : > { %v1519_v12 = vpop.f32.mrf.mxu1 }
 0x244   : > { %v1520_v7 = vadd.f32 %v1519_v12, %v1350_v17  ;;  %v1774_v26 = vpop.f32.mrf.mxu0  ;;  %v5515_v18 = vadd.f32 %v4190_v60, %v1528_v39 }
 0x245   : > { %v4175_v21 = vpop.f32.mrf.mxu1 }
 0x246   : > { %v1541_v34 = vadd.f32 %v4175_v21, %v4157_v53  ;;  %v5517_v28 = vpop.f32.mrf.mxu0  ;;  %v5519_v24 = vadd.f32 %v1758_v43, %v1520_v7 }
 0x247   : > { %v1532_v4 = vpop.f32.mrf.mxu1 }
 0x248   : > { %v1533_v23 = vadd.f32 %v1532_v4, %v1363_v2  ;;  %v5521_v1 = vpop.f32.mrf.mxu0  ;;  %v5523_v54 = vadd.f32 %v4193_v0, %v1541_v34 }
 0x249   : > { %v4176_v45 = vpop.f32.mrf.mxu1 }
 0x24a   : > { %v1544_v36 = vadd.f32 %v4176_v45, %v4158_v3  ;;  %v5525_v32 = vpop.f32.mrf.mxu0  ;;  %v5527_v17 = vadd.f32 %v1771_v35, %v1533_v23 }
 0x24b   : > { %v1535_v57 = vpop.f32.mrf.mxu1 }
 0x24c   : > { %5756 = vst [vmem:[#allocation3_spill] sm:$0xff] %v5527_v17  ;;  %v1536_v15 = vadd.f32 %v1535_v57, %v1366_v63  ;;  %v5529_v55 = vpop.f32.mrf.mxu0  ;;  %v5531_v53 = vadd.f32 %v4194_v25, %v1544_v36 }
 0x24d   : > { %v4199_v27 = vpop.f32.mrf.mxu1 }
 0x24e   : > { %5757 = vst [vmem:[#allocation4_spill] sm:$0xff] %v5531_v53  ;;  %v5533_v41 = vpop.f32.mrf.mxu0  ;;  %v5535_v2 = vadd.f32 %v1774_v26, %v1536_v15 }
 0x24f   : > { %v1928_v48 = vpop.f32.mrf.mxu1 }
 0x250   : > { %5758 = vst [vmem:[#allocation5_spill] sm:$0xff] %v5535_v2  ;;  %v5537_v19 = vpop.f32.mrf.mxu0 }
 0x251   : > { %v4200_v10 = vpop.f32.mrf.mxu1 }
 0x252   : > { %v5539_v3 = vpop.f32.mrf.mxu0 }
 0x253   : > { %v1931_v59 = vpop.f32.mrf.mxu1 }
 0x254   : > { %v5541_v33 = vpop.f32.mrf.mxu0 }
 0x255   : > { %v4203_v38 = vpop.f32.mrf.mxu1 }
 0x256   : > { %v5543_v63 = vpop.f32.mrf.mxu0 }
 0x257   : > { %v1944_v44 = vpop.f32.mrf.mxu1 }
 0x258   : > { %v5545_v30 = vpop.f32.mrf.mxu0 }
 0x259   : > { %v5547_v11 = vpop.f32.mrf.mxu1 }
 0x25a   : > { %v5549_v40 = vpop.f32.mrf.mxu0 }
 0x25b   : > { %5759 = vst [vmem:[#allocation6_spill] sm:$0xff] %v5549_v40  ;;  %v5551_v20 = vpop.f32.mrf.mxu1 }
 0x25c   : > { %v5553_v8 = vpop.f32.mrf.mxu0 }
 0x25d   : > { %5760 = vst [vmem:[#allocation7_spill] sm:$0xff] %v5553_v8  ;;  %v5555_v47 = vpop.f32.mrf.mxu1 }
 0x25e   : > { %v5557_v14 = vpop.f32.mrf.mxu0 }
 0x25f   : > { %5761 = vst [vmem:[#allocation8_spill] sm:$0xff] %v5557_v14  ;;  %v5559_v37 = vpop.f32.mrf.mxu1 }
 0x260   : > { %v5561_v56 = vpop.f32.mrf.mxu0 }
 0x261   : > { %5762 = vst [vmem:[#allocation9_spill] sm:$0xff] %v5561_v56  ;;  %v5563_v60 = vpop.f32.mrf.mxu1 }
 0x262   : > { %v5565_v50 = vpop.f32.mrf.mxu0 }
 0x263   : > { %5763 = vst [vmem:[#allocation10_spill] sm:$0xff] %v5565_v50  ;;  %v5567_v31 = vpop.f32.mrf.mxu1 }
 0x264   : > { %v5569_v43 = vpop.f32.mrf.mxu0 }
 0x265   : > { %5764 = vst [vmem:[#allocation11_spill] sm:$0xff] %v5569_v43  ;;  %v5571_v29 = vpop.f32.mrf.mxu1 }
 0x266   : > { %v4253_v51 = vpop.f32.mrf.mxu0 }
 0x267   : > { %v5573_v0 = vpop.f32.mrf.mxu1 }
 0x268   : > { %5765 = vst [vmem:[#allocation12_spill] sm:$0xff] %v5573_v0  ;;  %v2781_v13 = vpop.f32.mrf.mxu0 }
 0x269   : > { %v5575_v58 = vpop.f32.mrf.mxu1 }
 0x26a   : > { %5766 = vst [vmem:[#allocation13_spill] sm:$0xff] %v5575_v58  ;;  %v4254_v35 = vpop.f32.mrf.mxu0 }
 0x26b   : > { %v5577_v61 = vpop.f32.mrf.mxu1 }
 0x26c   : > { %5767 = vst [vmem:[#allocation14_spill] sm:$0xff] %v5577_v61  ;;  %v5579_v39 = vpop.f32.mrf.mxu0 }
 0x26d   : > { %v4235_v25 = vpop.f32.mrf.mxu1 }
 0x26e   : > { %v5581_v12 = vpop.f32.mrf.mxu0 }
 0x26f   : > { %v2576_v7 = vpop.f32.mrf.mxu1 }
 0x270   : > { %v5583_v26 = vpop.f32.mrf.mxu0 }
 0x271   : > { %v4236_v21 = vpop.f32.mrf.mxu1 }
 0x272   : > { %v5585_v34 = vpop.f32.mrf.mxu0 }
 0x273   : > { %v2579_v4 = vpop.f32.mrf.mxu1 }
 0x274   : > { %v5587_v23 = vpop.f32.mrf.mxu0 }
 0x275   : > { %5768 = vst [vmem:[#allocation15_spill] sm:$0xff] %v5587_v23  ;;  %v4239_v45 = vpop.f32.mrf.mxu1 }
 0x276   : > { %v5589_v36 = vpop.f32.mrf.mxu0 }
 0x277   : > { %5769 = vst [vmem:[#allocation16_spill] sm:$0xff] %v5589_v36  ;;  %v2592_v57 = vpop.f32.mrf.mxu1 }
 0x278   : > { %v5591_v15 = vpop.f32.mrf.mxu0 }
 0x279   : > { %5770 = vst [vmem:[#allocation17_spill] sm:$0xff] %v5591_v15  ;;  %v5593_v43 = vpop.f32.mrf.mxu1  ;;  %v1993_v15 = vadd.f32 %v4199_v27, %v5495_v42 }
 0x27a   : > { %v5595_v50 = vpop.f32.mrf.mxu0 }
 0x27b   : > { %5771 = vst [vmem:[#allocation18_spill] sm:$0xff] %v5595_v50  ;;  %v5597_v56 = vpop.f32.mrf.mxu1  ;;  %v1991_v50 = vadd.f32 %v1928_v48, %v5497_v22  ;;  %v2381_v23 = vadd.f32 %v5517_v28, %v1993_v15 }
 0x27c   : > { %v5599_v61 = vpop.f32.mrf.mxu0 }
 0x27d   : > { %5772 = vst [vmem:[#allocation19_spill] sm:$0xff] %v5599_v61  ;;  %v5601_v2 = vpop.f32.mrf.mxu1  ;;  %v2641_v42 = vadd.f32 %v4235_v25, %v2381_v23  ;;  %v2379_v27 = vadd.f32 %v5521_v1, %v1991_v50  ;;  %v1998_v1 = vadd.f32 %v5547_v11, %v5507_v52  ;;  %v2001_v52 = vadd.f32 %v5555_v47, %v5511_v46 }
 0x27e   : > { %v5603_v14 = vpop.f32.mrf.mxu0 }
 0x27f   : > { %5773 = vst [vmem:[#allocation20_spill] sm:$0xff] %v5603_v14  ;;  %v5605_v58 = vpop.f32.mrf.mxu1  ;;  %v1994_v14 = vadd.f32 %v4200_v10, %v5499_v5  ;;  %v2639_v48 = vadd.f32 %v2576_v7, %v2379_v27  ;;  %v1995_v5 = vadd.f32 %v1944_v44, %v5505_v6  ;;  %v1996_v6 = vadd.f32 %v5551_v20, %v5509_v62 }
 0x280   : > { %v5607_v53 = vpop.f32.mrf.mxu0  ;;  %v2386_v11 = vadd.f32 %v5539_v3, %v1998_v1 }
 0x281   : > { %5774 = vst [vmem:[#allocation21_spill] sm:$0xff] %v5607_v53  ;;  %v5609_v36 = vpop.f32.mrf.mxu1  ;;  %v2844_v7 = vadd.f32 %v2781_v13, %v2639_v48  ;;  %v2000_v48 = vadd.f32 %v5567_v31, %v5519_v24  ;;  %v5780_v24 = vld [vmem:[#allocation6_spill] sm:$0xff] }
 0x282   : > { %5775 = vst [vmem:[#allocation22_spill] sm:$0xff] %v5609_v36  ;;  %v5612_v8 = vpop.f32.mrf.mxu0  ;;  %v1992_v36 = vadd.f32 %v1931_v59, %v5501_v49  ;;  %v2846_v49 = vadd.f32 %v4253_v51, %v2641_v42  ;;  %v2646_v47 = vadd.f32 %v5593_v43, %v2386_v11  ;;  %v2389_v42 = vadd.f32 %v5543_v63, %v2001_v52  ;;  %v5788_v52 = vld [vmem:[#allocation13_spill] sm:$0xff]  ;;  %v5789_v11 = vld [vmem:[#allocation8_spill] sm:$0xff] }
 0x283   : > { %5776 = vst [vmem:[#allocation23_spill] sm:$0xff] %v5612_v8  ;;  %v5614_v0 = vpop.f32.mrf.mxu1 }
 0x284   : > { %5777 = vst [vmem:[#allocation24_spill] sm:$0xff] %v5614_v0  ;;  %v5617_v17 = vpop.f32.mrf.mxu0  ;;  %v1997_v0 = vadd.f32 %v4203_v38, %v5503_v16  ;;  %v2380_v15 = vadd.f32 %v5529_v55, %v1992_v36 }
 0x285   : > { %5778 = vst [vmem:[#allocation25_spill] sm:$0xff] %v5617_v17  ;;  %v5619_v61 = vpop.f32.mrf.mxu1  ;;  %v2382_v17 = vadd.f32 %v5525_v32, %v1994_v14 }
 0x286   : > { %5779 = vst [vmem:[#allocation26_spill] sm:$0xff] %v5619_v61  ;;  %v4289_v40 = vpop.f32.mrf.mxu0  ;;  %v2385_v16 = vadd.f32 %v5533_v41, %v1997_v0  ;;  %v2640_v50 = vadd.f32 %v2579_v4, %v2380_v15 }
 0x287   : > { %v5623_v53 = vpop.f32.mrf.mxu1  ;;  %v2642_v10 = vadd.f32 %v4236_v21, %v2382_v17  ;;  %v2383_v17 = vadd.f32 %v5537_v19, %v1995_v5  ;;  %v2649_v5 = vadd.f32 %v5601_v2, %v2389_v42  ;;  %v5795_v42 = vld [vmem:[#allocation9_spill] sm:$0xff] }
 0x288   : > { %v3429_v8 = vpop.f32.mrf.mxu0  ;;  %v2645_v44 = vadd.f32 %v4239_v45, %v2385_v16  ;;  %v2845_v20 = vadd.f32 %v5579_v39, %v2640_v50  ;;  %v2002_v39 = vadd.f32 %v5563_v60, %v5515_v18 }
 0x289   : > { %v5628_v22 = vpop.f32.mrf.mxu1  ;;  %v2847_v21 = vadd.f32 %v4254_v35, %v2642_v10  ;;  %v2643_v41 = vadd.f32 %v2592_v57, %v2383_v17  ;;  %v2384_v35 = vadd.f32 %v5541_v33, %v1996_v6  ;;  %v2851_v10 = vadd.f32 %v5585_v34, %v2646_v47  ;;  %v5783_v34 = vld [vmem:[#allocation12_spill] sm:$0xff]  ;;  %v5784_v6 = vld [vmem:[#allocation7_spill] sm:$0xff]  ;;  %v5786_v17 = vld [vmem:[#allocation22_spill] sm:$0xff] }
 0x28a   : > { %v4290_v61 = vpop.f32.mrf.mxu0  ;;  %v2850_v46 = vadd.f32 %v5581_v12, %v2645_v44  ;;  %v2390_v31 = vadd.f32 %v5780_v24, %v2002_v39  ;;  %v2388_v44 = vadd.f32 %v5784_v6, %v2000_v48  ;;  %v5799_v24 = vld [vmem:[#allocation11_spill] sm:$0xff] }
 0x28b   : > { %v5632_v28 = vpop.f32.mrf.mxu1  ;;  %v2848_v33 = vadd.f32 %v5583_v26, %v2643_v41 }
 0x28c   : > { %v3432_v59 = vpop.f32.mrf.mxu0 }
 0x28d   : > { %v4271_v38 = vpop.f32.mrf.mxu1 }
 0x28e   : > { %v3234_v25 = vadd.f32 %v4271_v38, %v2846_v49  ;;  %v4293_v32 = vpop.f32.mrf.mxu0  ;;  %v2005_v49 = vadd.f32 %v5571_v29, %v5523_v54  ;;  %v5781_v38 = vld [vmem:[#allocation15_spill] sm:$0xff]  ;;  %v5785_v29 = vld [vmem:[#allocation16_spill] sm:$0xff] }
 0x28f   : > { %v3169_v14 = vpop.f32.mrf.mxu1 }
 0x290   : > { %v3494_v55 = vadd.f32 %v4289_v40, %v3234_v25  ;;  %v3232_v51 = vadd.f32 %v3169_v14, %v2844_v7  ;;  %v3445_v23 = vpop.f32.mrf.mxu0  ;;  %v1999_v40 = vadd.f32 %v5559_v37, %v5513_v9  ;;  %v2644_v37 = vadd.f32 %v5597_v56, %v2384_v35  ;;  %v5782_v7 = vld [vmem:[#allocation3_spill] sm:$0xff] }
 0x291   : > { %v4272_v0 = vpop.f32.mrf.mxu1  ;;  %v2650_v14 = vadd.f32 %v5786_v17, %v2390_v31  ;;  %v5802_v17 = vld [vmem:[#allocation23_spill] sm:$0xff] }
 0x292   : > { %v3964_v13 = vpack.c.bf16 %v3494_v55, %v3494_v55  ;;  %v3492_v4 = vadd.f32 %v3429_v8, %v3232_v51  ;;  %v3235_v62 = vadd.f32 %v4272_v0, %v2847_v21  ;;  %v4294_v19 = vpop.f32.mrf.mxu0  ;;  %v2387_v18 = vadd.f32 %v5545_v30, %v1999_v40  ;;  %v5791_v40 = vld [vmem:[#allocation24_spill] sm:$0xff] }
 0x293   : > { %v3172_v45 = vpop.f32.mrf.mxu1  ;;  %v2849_v50 = vadd.f32 %v5781_v38, %v2644_v37  ;;  %v2393_v0 = vadd.f32 %v5789_v11, %v2005_v49  ;;  %v2648_v35 = vadd.f32 %v5791_v40, %v2388_v44  ;;  %v5798_v49 = vld [vmem:[#allocation19_spill] sm:$0xff] }
 0x294   : > { %3575 = vst.msk [vmem:[%s4516_s22 + $0x8] sm:$0xf] %vm3572_vm3, %v3964_v13  ;;  %v3962_v3 = vpack.c.bf16 %v3492_v4, %v3492_v4  ;;  %v3495_v36 = vadd.f32 %v4290_v61, %v3235_v62  ;;  %v3233_v8 = vadd.f32 %v3172_v45, %v2845_v20  ;;  %v3448_v57 = vpop.f32.mrf.mxu0  ;;  %v5790_v4 = vld [vmem:[#allocation17_spill] sm:$0xff] }
 0x295   : > { %v4275_v9 = vpop.f32.mrf.mxu1 }
 0x296   : > { %3573 = vst.msk [vmem:[%s4516_s22] sm:$0xf] %vm3572_vm3, %v3962_v3  ;;  %v3965_v43 = vpack.c.bf16 %v3495_v36, %v3495_v36  ;;  %v3493_v12 = vadd.f32 %v3432_v59, %v3233_v8  ;;  %v3238_v27 = vadd.f32 %v4275_v9, %v2850_v46  ;;  %v4297_v61 = vpop.f32.mrf.mxu0  ;;  %v2647_v59 = vadd.f32 %v5605_v58, %v2387_v18  ;;  %v5793_v3 = vld [vmem:[#allocation14_spill] sm:$0xff] }
 0x297   : > { %v3185_v63 = vpop.f32.mrf.mxu1  ;;  %v2854_v58 = vadd.f32 %v5785_v29, %v2649_v5  ;;  %v5794_v8 = vld [vmem:[#allocation26_spill] sm:$0xff] }
 0x298   : > { %3576 = vst.msk [vmem:[%s4516_s22 + $0xc] sm:$0xf] %vm3572_vm3, %v3965_v43  ;;  %v3963_v60 = vpack.c.bf16 %v3493_v12, %v3493_v12  ;;  %v3498_v26 = vadd.f32 %v4293_v32, %v3238_v27  ;;  %v3236_v56 = vadd.f32 %v3185_v63, %v2848_v33  ;;  %v3461_v15 = vpop.f32.mrf.mxu0  ;;  %v2003_v32 = vadd.f32 %v5783_v34, %v5782_v7  ;;  %v5796_v27 = vld [vmem:[#allocation18_spill] sm:$0xff] }
 0x299   : > { %v4276_v2 = vpop.f32.mrf.mxu1  ;;  %v2852_v62 = vadd.f32 %v5790_v4, %v2647_v59  ;;  %v2653_v39 = vadd.f32 %v5794_v8, %v2393_v0  ;;  %v2855_v48 = vadd.f32 %v5796_v27, %v2650_v14  ;;  %v2853_v59 = vadd.f32 %v5798_v49, %v2648_v35 }
 0x29a   : > { %3574 = vst.msk [vmem:[%s4516_s22 + $0x4] sm:$0xf] %vm3572_vm3, %v3963_v60  ;;  %v3968_v30 = vpack.c.bf16 %v3498_v26, %v3498_v26  ;;  %v3496_v1 = vadd.f32 %v3445_v23, %v3236_v56  ;;  %v3239_v16 = vadd.f32 %v4276_v2, %v2851_v10  ;;  %v4298_v25 = vpop.f32.mrf.mxu0  ;;  %v5787_v23 = vld [vmem:[#allocation4_spill] sm:$0xff]  ;;  %v2391_v9 = vadd.f32 %v5795_v42, %v2003_v32 }
 0x29b   : > { %v3188_v54 = vpop.f32.mrf.mxu1  ;;  %v2006_v41 = vadd.f32 %v5788_v52, %v5787_v23  ;;  %v5800_v2 = vld [vmem:[#allocation20_spill] sm:$0xff]  ;;  %v5803_v52 = vld [vmem:[#allocation25_spill] sm:$0xff] }
 0x29c   : > { %3579 = vst.msk [vmem:[%s4516_s22 + $0x18] sm:$0xf] %vm3572_vm3, %v3968_v30  ;;  %v3966_v55 = vpack.c.bf16 %v3496_v1, %v3496_v1  ;;  %v3499_v51 = vadd.f32 %v4294_v19, %v3239_v16  ;;  %v3237_v21 = vadd.f32 %v3188_v54, %v2849_v50  ;;  %v3464_v20 = vpop.f32.mrf.mxu0  ;;  %v5792_v19 = vld [vmem:[#allocation5_spill] sm:$0xff]  ;;  %v2651_v5 = vadd.f32 %v5623_v53, %v2391_v9 }
 0x29d   : > { %v4279_v13 = vpop.f32.mrf.mxu1  ;;  %v2004_v36 = vadd.f32 %v5793_v3, %v5792_v19  ;;  %v2858_v30 = vadd.f32 %v5800_v2, %v2653_v39 }
 0x29e   : > { %3577 = vst.msk [vmem:[%s4516_s22 + $0x10] sm:$0xf] %vm3572_vm3, %v3966_v55  ;;  %v3969_v45 = vpack.c.bf16 %v3499_v51, %v3499_v51  ;;  %v3497_v46 = vadd.f32 %v3448_v57, %v3237_v21  ;;  %v3242_v47 = vadd.f32 %v4279_v13, %v2854_v58  ;;  %v5797_v57 = vld [vmem:[#allocation10_spill] sm:$0xff]  ;;  %v4301_v60 = vpop.f32.mrf.mxu0 }
 0x29f   : > { %v3201_v33 = vpop.f32.mrf.mxu1  ;;  %v2394_v18 = vadd.f32 %v5797_v57, %v2006_v41 }
 0x2a0   : > { %3580 = vst.msk [vmem:[%s4516_s22 + $0x1c] sm:$0xf] %vm3572_vm3, %v3969_v45  ;;  %v3967_v37 = vpack.c.bf16 %v3497_v46, %v3497_v46  ;;  %v3502_v43 = vadd.f32 %v4297_v61, %v3242_v47  ;;  %v3240_v12 = vadd.f32 %v3201_v33, %v2852_v62  ;;  %v2392_v61 = vadd.f32 %v5799_v24, %v2004_v36  ;;  %v3477_v50 = vpop.f32.mrf.mxu0 }
 0x2a1   : > { %v4280_v63 = vpop.f32.mrf.mxu1  ;;  %v2654_v53 = vadd.f32 %v5628_v22, %v2394_v18 }
 0x2a2   : > { %3578 = vst.msk [vmem:[%s4516_s22 + $0x14] sm:$0xf] %vm3572_vm3, %v3967_v37  ;;  %v3972_v26 = vpack.c.bf16 %v3502_v43, %v3502_v43  ;;  %v3500_v56 = vadd.f32 %v3461_v15, %v3240_v12  ;;  %v3243_v10 = vadd.f32 %v4280_v63, %v2855_v48  ;;  %v5801_v15 = vld [vmem:[#allocation21_spill] sm:$0xff]  ;;  %v2652_v32 = vadd.f32 %v5632_v28, %v2392_v61  ;;  %v4302_v55 = vpop.f32.mrf.mxu0 }
 0x2a3   : > { %v3204_v31 = vpop.f32.mrf.mxu1  ;;  %v2856_v34 = vadd.f32 %v5801_v15, %v2651_v5  ;;  %v2859_v14 = vadd.f32 %v5802_v17, %v2654_v53 }
 0x2a4   : > { %3583 = vst.msk [vmem:[%s4516_s22 + $0x28] sm:$0xf] %vm3572_vm3, %v3972_v26  ;;  %v3970_v1 = vpack.c.bf16 %v3500_v56, %v3500_v56  ;;  %v3503_v16 = vadd.f32 %v4298_v25, %v3243_v10  ;;  %v3241_v38 = vadd.f32 %v3204_v31, %v2853_v59  ;;  %v2857_v41 = vadd.f32 %v5803_v52, %v2652_v32  ;;  %v3480_v62 = vpop.f32.mrf.mxu0 }
 0x2a5   : > { %v4283_v7 = vpop.f32.mrf.mxu1 }
 0x2a6   : > { %3581 = vst.msk [vmem:[%s4516_s22 + $0x20] sm:$0xf] %vm3572_vm3, %v3970_v1  ;;  %v3973_v6 = vpack.c.bf16 %v3503_v16, %v3503_v16  ;;  %v3501_v44 = vadd.f32 %v3464_v20, %v3241_v38  ;;  %v3246_v54 = vadd.f32 %v4283_v7, %v2858_v30 }
 0x2a7   : > { %v3217_v29 = vpop.f32.mrf.mxu1 }
 0x2a8   : > { %3584 = vst.msk [vmem:[%s4516_s22 + $0x2c] sm:$0xf] %vm3572_vm3, %v3973_v6  ;;  %v3971_v22 = vpack.c.bf16 %v3501_v44, %v3501_v44  ;;  %v3506_v58 = vadd.f32 %v4301_v60, %v3246_v54  ;;  %v3244_v25 = vadd.f32 %v3217_v29, %v2856_v34 }
 0x2a9   : > { %v4284_v51 = vpop.f32.mrf.mxu1 }
 0x2aa   : > { %3582 = vst.msk [vmem:[%s4516_s22 + $0x24] sm:$0xf] %vm3572_vm3, %v3971_v22  ;;  %v3976_v28 = vpack.c.bf16 %v3506_v58, %v3506_v58  ;;  %v3504_v21 = vadd.f32 %v3477_v50, %v3244_v25  ;;  %v3247_v23 = vadd.f32 %v4284_v51, %v2859_v14 }
 0x2ab   : > { %v3220_v11 = vpop.f32.mrf.mxu1 }
 0x2ac   : > { %3587 = vst.msk [vmem:[%s4516_s22 + $0x38] sm:$0xf] %vm3572_vm3, %v3976_v28  ;;  %v3974_v0 = vpack.c.bf16 %v3504_v21, %v3504_v21  ;;  %v3507_v13 = vadd.f32 %v4302_v55, %v3247_v23  ;;  %v3245_v4 = vadd.f32 %v3220_v11, %v2857_v41 }
 0x2ae   : > { %3585 = vst.msk [vmem:[%s4516_s22 + $0x30] sm:$0xf] %vm3572_vm3, %v3974_v0  ;;  %v3977_v20 = vpack.c.bf16 %v3507_v13, %v3507_v13  ;;  %v3505_v40 = vadd.f32 %v3480_v62, %v3245_v4 }
 0x2b0   : > { %3588 = vst.msk [vmem:[%s4516_s22 + $0x3c] sm:$0xf] %vm3572_vm3, %v3977_v20  ;;  %v3975_v35 = vpack.c.bf16 %v3505_v40, %v3505_v40 }
 0x2b2   : > { %3586 = vst.msk [vmem:[%s4516_s22 + $0x34] sm:$0xf] %vm3572_vm3, %v3975_v35 }
 0x2b3 PF: > { %s16_s25 = sadd.s32 1, %s4427_s25   ;;  %s5804_s21 = smov %s4419_s23 }
 0x2b4   : > { %p13_p9 = scmp.ge.s32.totalorder %s16_s25, 6   ;;  %s5805_s22 = smov %s4423_s24 }
 0x2b5   : > { %s5806_s23 = smov %s5809_s26  ;;  %s5807_s24 = smov %s5813_s27 }
 0x2b6   :  { %15 = sbr.rel (!%p13_p9) target bundleno = 3 (0x3), region = 94 }

</bundles_post_ra>
